<compile_context>
chip_gen: v5e
topology: v5e:2x2
jax: 0.10.0
libtpu: 0.0.40
codegen_flags: <defaults>
</compile_context>

<pallas_src>
import functools
import math

import jax
import jax.numpy as jnp
from jax.experimental import pallas as pl
from jax.experimental.pallas import tpu as pltpu


def _spatial_attention_kernel(x_ref, mask_ref, w_ref, o_ref,
                              sum_scr, max_scr, avg_pad, max_pad,
                              *, H, W, k, p, C, c_blk):
    """One (batch-block, channel-block) grid step.

    x_ref   : (NB, c_blk, H*W)   VMEM   -- flat spatial, lane axis = H*W
    mask_ref: (k, H*W)           VMEM   -- per-column validity mask per kj tap
    w_ref   : (2*k*k,)           SMEM   -- conv weight [in0 taps..., in1 taps...]
    o_ref   : (NB, H*W)          VMEM   -- output block (written on last C step)
    sum_scr : (NB, H*W)  f32     VMEM scratch -- running channel sum
    max_scr : (NB, H*W)  x.dtype VMEM scratch -- running channel max
    avg_pad : (NB, L)    f32     VMEM scratch -- zero-padded flat avg plane
    max_pad : (NB, L)    f32     VMEM scratch -- zero-padded flat max plane
    """
    HW = H * W
    F = p * (W + 1)          # front padding of the flat plane
    c_idx = pl.program_id(1)

    # ---- init accumulators on the first channel chunk ---------------------
    @pl.when(c_idx == 0)
    def _init():
        sum_scr[...] = jnp.zeros_like(sum_scr)
        max_scr[...] = jnp.full_like(max_scr, -jnp.inf)

    # ---- fused single pass over this channel chunk: f32 sum + running max -
    s = sum_scr[...]
    m = max_scr[...]
    for cc in range(c_blk):
        row = x_ref[:, cc, :]                 # (NB, H*W), input dtype
        s = s + row.astype(jnp.float32)
        m = jnp.maximum(m, row)
    sum_scr[...] = s
    max_scr[...] = m

    # ---- last channel chunk: pad planes, 7x7 conv (VPU), sigmoid, store ---
    @pl.when(c_idx == pl.num_programs(1) - 1)
    def _finalize():
        avg = sum_scr[...] * (1.0 / C)                       # (NB, H*W) f32
        mx = max_scr[...].astype(jnp.float32)

        # Zero-pad the reduced planes in VMEM (flat layout, row stride W).
        avg_pad[...] = jnp.zeros_like(avg_pad)
        max_pad[...] = jnp.zeros_like(max_pad)
        avg_pad[:, pl.ds(F, HW)] = avg
        max_pad[:, pl.ds(F, HW)] = mx

        acc = jnp.zeros_like(avg)
        for kj in range(k):
            # mask out flat shifts that wrapped into the neighbouring row
            mask = mask_ref[pl.ds(kj, 1), :]                 # (1, H*W)
            part = jnp.zeros_like(avg)
            for ki in range(k):
                off = ki * W + kj      # flat tap offset into the padded plane
                part = part + w_ref[ki * k + kj] * avg_pad[:, pl.ds(off, HW)]
                part = part + w_ref[k * k + ki * k + kj] * max_pad[:, pl.ds(off, HW)]
            acc = acc + mask * part

        o_ref[...] = jax.nn.sigmoid(acc).astype(o_ref.dtype)


def _pick_block(total, preferred, multiple):
    """Largest chunk <= preferred that divides `total` and is a multiple of
    `multiple`; falls back to the full axis (always a legal block shape)."""
    if total <= preferred:
        return total
    c = preferred
    while c >= multiple:
        if total % c == 0:
            return c
        c -= multiple
    return total


def spatial_attention(x, weight, kernel_size=7):
    """x: (N, C, H, W); weight: (1, 2, k, k), no bias. Returns (N, 1, H, W)."""
    assert kernel_size in (3, 7), "kernel size must be 3 or 7"
    p = 3 if kernel_size == 7 else 1
    k = kernel_size
    N, C, H, W = x.shape
    HW = H * W
    L = HW + 2 * p * (W + 1)        # flat padded plane length (exactly tight)

    nb = _pick_block(N, 8, 8)        # batch samples per block (sublane packing)
    cb = _pick_block(C, 128, 8)      # channels per grid step (bounds VMEM)
    grid = (N // nb, C // cb)

    x_flat = x.reshape(N, C, HW)                      # free, layout-preserving
    w_flat = weight.reshape(-1).astype(jnp.float32)   # (2*k*k,) scalar table

    # Per-kj column-validity masks (precomputed, tiny): flat position n has
    # column j = n mod W; tap kj is valid iff 0 <= j + kj - p < W.
    j = jnp.arange(W)[None, :]                        # (1, W)
    kjs = jnp.arange(k)[:, None]                      # (k, 1)
    col_valid = ((j + kjs - p) >= 0) & ((j + kjs - p) < W)      # (k, W)
    col_mask = jnp.tile(col_valid.astype(jnp.float32), (1, H))  # (k, H*W)

    kernel = functools.partial(_spatial_attention_kernel,
                               H=H, W=W, k=k, p=p, C=C, c_blk=cb)

    out_flat = pl.pallas_call(
        kernel,
        out_shape=jax.ShapeDtypeStruct((N, HW), x.dtype),
        grid=grid,
        in_specs=[
            pl.BlockSpec((nb, cb, HW), lambda b, c: (b, c, 0)),
            pl.BlockSpec((k, HW), lambda b, c: (0, 0)),
            pl.BlockSpec(memory_space=pltpu.SMEM),    # small scalar weights
        ],
        out_specs=pl.BlockSpec((nb, HW), lambda b, c: (b, 0)),
        scratch_shapes=[
            pltpu.VMEM((nb, HW), jnp.float32),   # channel-sum accumulator
            pltpu.VMEM((nb, HW), x.dtype),       # channel-max accumulator
            pltpu.VMEM((nb, L), jnp.float32),    # padded flat avg plane
            pltpu.VMEM((nb, L), jnp.float32),    # padded flat max plane
        ],
        compiler_params=pltpu.CompilerParams(
            dimension_semantics=("parallel", "arbitrary"),
        ),
    )(x_flat, col_mask, w_flat)

    return out_flat.reshape(N, 1, H, W)


def _reference(x, weight, kernel_size=7):
    # Pure-JAX reference mirroring the PyTorch forward (for correctness check).
    pad = 3 if kernel_size == 7 else 1
    avgout = jnp.mean(x, axis=1, keepdims=True)
    maxout = jnp.max(x, axis=1, keepdims=True)
    cat = jnp.concatenate([avgout, maxout], axis=1)           # (N, 2, H, W)
    y = jax.lax.conv_general_dilated(
        cat, weight, window_strides=(1, 1),
        padding=[(pad, pad), (pad, pad)],
        dimension_numbers=("NCHW", "OIHW", "NCHW"))
    return jax.nn.sigmoid(y)


if __name__ == "__main__":
    key = jax.random.PRNGKey(0)
    kx, kw = jax.random.split(key)

    N, C, H, W = 2, 4, 16, 16
    kernel_size = 7

    x = jax.random.normal(kx, (N, C, H, W), dtype=jnp.float32)
    # Conv2d(2, 1, 7, bias=False)-style deterministic weight.
    fan_in = 2 * kernel_size * kernel_size
    weight = jax.random.normal(kw, (1, 2, kernel_size, kernel_size),
                               dtype=jnp.float32) * (2.0 / fan_in) ** 0.5

    out = spatial_attention(x, weight, kernel_size)
    out = jax.block_until_ready(out)

    ref = _reference(x, weight, kernel_size)
    assert out.shape == (N, 1, H, W)
    assert jnp.allclose(out, ref, atol=1e-5, rtol=1e-5), "mismatch vs reference"

    print("KERNEL_OK")
</pallas_src>

<mosaic_0001>
module attributes {stable_mosaic.version = 11 : i64} {
  func.func @_spatial_attention_kernel(%arg0: i32, %arg1: i32, %arg2: memref<2x4x256xf32, #tpu.memory_space<vmem>>, %arg3: memref<7x256xf32, #tpu.memory_space<vmem>>, %arg4: memref<98xf32, #tpu.memory_space<smem>>, %arg5: memref<2x256xf32, #tpu.memory_space<vmem>>, %arg6: memref<2x256xf32, #tpu.memory_space<vmem>>, %arg7: memref<2x256xf32, #tpu.memory_space<vmem>>, %arg8: memref<2x358xf32, #tpu.memory_space<vmem>>, %arg9: memref<2x358xf32, #tpu.memory_space<vmem>>) attributes {dimension_semantics = [#tpu.dimension_semantics<parallel>, #tpu.dimension_semantics<arbitrary>], iteration_bounds = array<i64: 1, 1>, scalar_prefetch = 0 : i64, scratch_operands = 4 : i64, tpu.core_type = #tpu.core_type<tc>, window_params = [{transform_indices = @transform_0, window_bounds = array<i64: 2, 4, 256>}, {pipeline_mode = #tpu.pipeline_mode<synchronous>, transform_indices = @transform_1, window_bounds = array<i64: 7, 256>}, {transform_indices = @transform_2, window_bounds = array<i64: 98>}, {transform_indices = @transform_3, window_bounds = array<i64: 2, 256>}]} {
    %c0_i32 = arith.constant 0 : i32
    %0 = arith.cmpi eq, %arg1, %c0_i32 : i32
    %1 = arith.extui %0 : i1 to i32
    %c0_i32_0 = arith.constant 0 : i32
    %2 = arith.cmpi ne, %1, %c0_i32_0 : i32
    scf.if %2 {
      %cst = arith.constant 0.000000e+00 : f32
      %26 = vector.broadcast %cst : f32 to vector<2x256xf32>
      %c0_19 = arith.constant 0 : index
      %c0_20 = arith.constant 0 : index
      %27 = vector.load %arg6[%c0_19, %c0_20] : memref<2x256xf32, #tpu.memory_space<vmem>>, vector<2x256xf32>
      tpu.vector_store %arg6[%c0_19, %c0_20], %26 {strides = array<i32>} : memref<2x256xf32, #tpu.memory_space<vmem>>, vector<2x256xf32>,
      %cst_21 = arith.constant 0xFF800000 : f32
      %28 = vector.broadcast %cst_21 : f32 to vector<2x256xf32>
      %c0_22 = arith.constant 0 : index
      %c0_23 = arith.constant 0 : index
      %29 = vector.load %arg7[%c0_22, %c0_23] : memref<2x256xf32, #tpu.memory_space<vmem>>, vector<2x256xf32>
      tpu.vector_store %arg7[%c0_22, %c0_23], %28 {strides = array<i32>} : memref<2x256xf32, #tpu.memory_space<vmem>>, vector<2x256xf32>,
    } else {
    }
    %c0 = arith.constant 0 : index
    %c0_1 = arith.constant 0 : index
    %3 = vector.load %arg6[%c0, %c0_1] : memref<2x256xf32, #tpu.memory_space<vmem>>, vector<2x256xf32>
    %c0_2 = arith.constant 0 : index
    %c0_3 = arith.constant 0 : index
    %4 = vector.load %arg7[%c0_2, %c0_3] : memref<2x256xf32, #tpu.memory_space<vmem>>, vector<2x256xf32>
    %c0_4 = arith.constant 0 : index
    %c0_5 = arith.constant 0 : index
    %c0_6 = arith.constant 0 : index
    %5 = vector.load %arg2[%c0_4, %c0_5, %c0_6] : memref<2x4x256xf32, #tpu.memory_space<vmem>>, vector<2x1x256xf32>
    %6 = vector.shape_cast %5 : vector<2x1x256xf32> to vector<2x256xf32>
    %7 = arith.addf %3, %6 : vector<2x256xf32>
    %8 = arith.maximumf %4, %6 : vector<2x256xf32>
    %c0_7 = arith.constant 0 : index
    %c1 = arith.constant 1 : index
    %c0_8 = arith.constant 0 : index
    %9 = vector.load %arg2[%c0_7, %c1, %c0_8] : memref<2x4x256xf32, #tpu.memory_space<vmem>>, vector<2x1x256xf32>
    %10 = vector.shape_cast %9 : vector<2x1x256xf32> to vector<2x256xf32>
    %11 = arith.addf %7, %10 : vector<2x256xf32>
    %12 = arith.maximumf %8, %10 : vector<2x256xf32>
    %c0_9 = arith.constant 0 : index
    %c2 = arith.constant 2 : index
    %c0_10 = arith.constant 0 : index
    %13 = vector.load %arg2[%c0_9, %c2, %c0_10] : memref<2x4x256xf32, #tpu.memory_space<vmem>>, vector<2x1x256xf32>
    %14 = vector.shape_cast %13 : vector<2x1x256xf32> to vector<2x256xf32>
    %15 = arith.addf %11, %14 : vector<2x256xf32>
    %16 = arith.maximumf %12, %14 : vector<2x256xf32>
    %c0_11 = arith.constant 0 : index
    %c3 = arith.constant 3 : index
    %c0_12 = arith.constant 0 : index
    %17 = vector.load %arg2[%c0_11, %c3, %c0_12] : memref<2x4x256xf32, #tpu.memory_space<vmem>>, vector<2x1x256xf32>
    %18 = vector.shape_cast %17 : vector<2x1x256xf32> to vector<2x256xf32>
    %19 = arith.addf %15, %18 : vector<2x256xf32>
    %20 = arith.maximumf %16, %18 : vector<2x256xf32>
    %c0_13 = arith.constant 0 : index
    %c0_14 = arith.constant 0 : index
    %21 = vector.load %arg6[%c0_13, %c0_14] : memref<2x256xf32, #tpu.memory_space<vmem>>, vector<2x256xf32>
    tpu.vector_store %arg6[%c0_13, %c0_14], %19 {strides = array<i32>} : memref<2x256xf32, #tpu.memory_space<vmem>>, vector<2x256xf32>,
    %c0_15 = arith.constant 0 : index
    %c0_16 = arith.constant 0 : index
    %22 = vector.load %arg7[%c0_15, %c0_16] : memref<2x256xf32, #tpu.memory_space<vmem>>, vector<2x256xf32>
    tpu.vector_store %arg7[%c0_15, %c0_16], %20 {strides = array<i32>} : memref<2x256xf32, #tpu.memory_space<vmem>>, vector<2x256xf32>,
    %c0_i32_17 = arith.constant 0 : i32
    %23 = arith.cmpi eq, %arg1, %c0_i32_17 : i32
    %24 = arith.extui %23 : i1 to i32
    %c0_i32_18 = arith.constant 0 : i32
    %25 = arith.cmpi ne, %24, %c0_i32_18 : i32
    scf.if %25 {
      %c0_19 = arith.constant 0 : index
      %c0_20 = arith.constant 0 : index
      %26 = vector.load %arg6[%c0_19, %c0_20] : memref<2x256xf32, #tpu.memory_space<vmem>>, vector<2x256xf32>
      %cst = arith.constant 2.500000e-01 : f32
      %27 = vector.broadcast %cst : f32 to vector<2x256xf32>
      %28 = arith.mulf %26, %27 : vector<2x256xf32>
      %c0_21 = arith.constant 0 : index
      %c0_22 = arith.constant 0 : index
      %29 = vector.load %arg7[%c0_21, %c0_22] : memref<2x256xf32, #tpu.memory_space<vmem>>, vector<2x256xf32>
      %cst_23 = arith.constant 0.000000e+00 : f32
      %30 = vector.broadcast %cst_23 : f32 to vector<2x358xf32>
      %c0_24 = arith.constant 0 : index
      %c0_25 = arith.constant 0 : index
      %31 = vector.load %arg8[%c0_24, %c0_25] : memref<2x358xf32, #tpu.memory_space<vmem>>, vector<2x358xf32>
      tpu.vector_store %arg8[%c0_24, %c0_25], %30 {strides = array<i32>} : memref<2x358xf32, #tpu.memory_space<vmem>>, vector<2x358xf32>,
      %cst_26 = arith.constant 0.000000e+00 : f32
      %32 = vector.broadcast %cst_26 : f32 to vector<2x358xf32>
      %c0_27 = arith.constant 0 : index
      %c0_28 = arith.constant 0 : index
      %33 = vector.load %arg9[%c0_27, %c0_28] : memref<2x358xf32, #tpu.memory_space<vmem>>, vector<2x358xf32>
      tpu.vector_store %arg9[%c0_27, %c0_28], %32 {strides = array<i32>} : memref<2x358xf32, #tpu.memory_space<vmem>>, vector<2x358xf32>,
      %c0_29 = arith.constant 0 : index
      %c51 = arith.constant 51 : index
      %34 = vector.load %arg8[%c0_29, %c51] : memref<2x358xf32, #tpu.memory_space<vmem>>, vector<2x256xf32>
      tpu.vector_store %arg8[%c0_29, %c51], %28 {strides = array<i32>} : memref<2x358xf32, #tpu.memory_space<vmem>>, vector<2x256xf32>,
      %c0_30 = arith.constant 0 : index
      %c51_31 = arith.constant 51 : index
      %35 = vector.load %arg9[%c0_30, %c51_31] : memref<2x358xf32, #tpu.memory_space<vmem>>, vector<2x256xf32>
      tpu.vector_store %arg9[%c0_30, %c51_31], %29 {strides = array<i32>} : memref<2x358xf32, #tpu.memory_space<vmem>>, vector<2x256xf32>,
      %cst_32 = arith.constant 0.000000e+00 : f32
      %36 = vector.broadcast %cst_32 : f32 to vector<2x256xf32>
      %c0_33 = arith.constant 0 : index
      %c0_34 = arith.constant 0 : index
      %37 = vector.load %arg3[%c0_33, %c0_34] : memref<7x256xf32, #tpu.memory_space<vmem>>, vector<1x256xf32>
      %cst_35 = arith.constant 0.000000e+00 : f32
      %38 = vector.broadcast %cst_35 : f32 to vector<2x256xf32>
      %c0_36 = arith.constant 0 : index
      %39 = memref.load %arg4[%c0_36] : memref<98xf32, #tpu.memory_space<smem>>
      %c0_37 = arith.constant 0 : index
      %c0_38 = arith.constant 0 : index
      %40 = vector.load %arg8[%c0_37, %c0_38] : memref<2x358xf32, #tpu.memory_space<vmem>>, vector<2x256xf32>
      %41 = vector.broadcast %39 : f32 to vector<2x256xf32>
      %42 = arith.mulf %41, %40 : vector<2x256xf32>
      %43 = arith.addf %38, %42 : vector<2x256xf32>
      %c49 = arith.constant 49 : index
      %44 = memref.load %arg4[%c49] : memref<98xf32, #tpu.memory_space<smem>>
      %c0_39 = arith.constant 0 : index
      %c0_40 = arith.constant 0 : index
      %45 = vector.load %arg9[%c0_39, %c0_40] : memref<2x358xf32, #tpu.memory_space<vmem>>, vector<2x256xf32>
      %46 = vector.broadcast %44 : f32 to vector<2x256xf32>
      %47 = arith.mulf %46, %45 : vector<2x256xf32>
      %48 = arith.addf %43, %47 : vector<2x256xf32>
      %c7 = arith.constant 7 : index
      %49 = memref.load %arg4[%c7] : memref<98xf32, #tpu.memory_space<smem>>
      %c0_41 = arith.constant 0 : index
      %c16 = arith.constant 16 : index
      %50 = vector.load %arg8[%c0_41, %c16] : memref<2x358xf32, #tpu.memory_space<vmem>>, vector<2x256xf32>
      %51 = vector.broadcast %49 : f32 to vector<2x256xf32>
      %52 = arith.mulf %51, %50 : vector<2x256xf32>
      %53 = arith.addf %48, %52 : vector<2x256xf32>
      %c56 = arith.constant 56 : index
      %54 = memref.load %arg4[%c56] : memref<98xf32, #tpu.memory_space<smem>>
      %c0_42 = arith.constant 0 : index
      %c16_43 = arith.constant 16 : index
      %55 = vector.load %arg9[%c0_42, %c16_43] : memref<2x358xf32, #tpu.memory_space<vmem>>, vector<2x256xf32>
      %56 = vector.broadcast %54 : f32 to vector<2x256xf32>
      %57 = arith.mulf %56, %55 : vector<2x256xf32>
      %58 = arith.addf %53, %57 : vector<2x256xf32>
      %c14 = arith.constant 14 : index
      %59 = memref.load %arg4[%c14] : memref<98xf32, #tpu.memory_space<smem>>
      %c0_44 = arith.constant 0 : index
      %c32 = arith.constant 32 : index
      %60 = vector.load %arg8[%c0_44, %c32] : memref<2x358xf32, #tpu.memory_space<vmem>>, vector<2x256xf32>
      %61 = vector.broadcast %59 : f32 to vector<2x256xf32>
      %62 = arith.mulf %61, %60 : vector<2x256xf32>
      %63 = arith.addf %58, %62 : vector<2x256xf32>
      %c63 = arith.constant 63 : index
      %64 = memref.load %arg4[%c63] : memref<98xf32, #tpu.memory_space<smem>>
      %c0_45 = arith.constant 0 : index
      %c32_46 = arith.constant 32 : index
      %65 = vector.load %arg9[%c0_45, %c32_46] : memref<2x358xf32, #tpu.memory_space<vmem>>, vector<2x256xf32>
      %66 = vector.broadcast %64 : f32 to vector<2x256xf32>
      %67 = arith.mulf %66, %65 : vector<2x256xf32>
      %68 = arith.addf %63, %67 : vector<2x256xf32>
      %c21 = arith.constant 21 : index
      %69 = memref.load %arg4[%c21] : memref<98xf32, #tpu.memory_space<smem>>
      %c0_47 = arith.constant 0 : index
      %c48 = arith.constant 48 : index
      %70 = vector.load %arg8[%c0_47, %c48] : memref<2x358xf32, #tpu.memory_space<vmem>>, vector<2x256xf32>
      %71 = vector.broadcast %69 : f32 to vector<2x256xf32>
      %72 = arith.mulf %71, %70 : vector<2x256xf32>
      %73 = arith.addf %68, %72 : vector<2x256xf32>
      %c70 = arith.constant 70 : index
      %74 = memref.load %arg4[%c70] : memref<98xf32, #tpu.memory_space<smem>>
      %c0_48 = arith.constant 0 : index
      %c48_49 = arith.constant 48 : index
      %75 = vector.load %arg9[%c0_48, %c48_49] : memref<2x358xf32, #tpu.memory_space<vmem>>, vector<2x256xf32>
      %76 = vector.broadcast %74 : f32 to vector<2x256xf32>
      %77 = arith.mulf %76, %75 : vector<2x256xf32>
      %78 = arith.addf %73, %77 : vector<2x256xf32>
      %c28 = arith.constant 28 : index
      %79 = memref.load %arg4[%c28] : memref<98xf32, #tpu.memory_space<smem>>
      %c0_50 = arith.constant 0 : index
      %c64 = arith.constant 64 : index
      %80 = vector.load %arg8[%c0_50, %c64] : memref<2x358xf32, #tpu.memory_space<vmem>>, vector<2x256xf32>
      %81 = vector.broadcast %79 : f32 to vector<2x256xf32>
      %82 = arith.mulf %81, %80 : vector<2x256xf32>
      %83 = arith.addf %78, %82 : vector<2x256xf32>
      %c77 = arith.constant 77 : index
      %84 = memref.load %arg4[%c77] : memref<98xf32, #tpu.memory_space<smem>>
      %c0_51 = arith.constant 0 : index
      %c64_52 = arith.constant 64 : index
      %85 = vector.load %arg9[%c0_51, %c64_52] : memref<2x358xf32, #tpu.memory_space<vmem>>, vector<2x256xf32>
      %86 = vector.broadcast %84 : f32 to vector<2x256xf32>
      %87 = arith.mulf %86, %85 : vector<2x256xf32>
      %88 = arith.addf %83, %87 : vector<2x256xf32>
      %c35 = arith.constant 35 : index
      %89 = memref.load %arg4[%c35] : memref<98xf32, #tpu.memory_space<smem>>
      %c0_53 = arith.constant 0 : index
      %c80 = arith.constant 80 : index
      %90 = vector.load %arg8[%c0_53, %c80] : memref<2x358xf32, #tpu.memory_space<vmem>>, vector<2x256xf32>
      %91 = vector.broadcast %89 : f32 to vector<2x256xf32>
      %92 = arith.mulf %91, %90 : vector<2x256xf32>
      %93 = arith.addf %88, %92 : vector<2x256xf32>
      %c84 = arith.constant 84 : index
      %94 = memref.load %arg4[%c84] : memref<98xf32, #tpu.memory_space<smem>>
      %c0_54 = arith.constant 0 : index
      %c80_55 = arith.constant 80 : index
      %95 = vector.load %arg9[%c0_54, %c80_55] : memref<2x358xf32, #tpu.memory_space<vmem>>, vector<2x256xf32>
      %96 = vector.broadcast %94 : f32 to vector<2x256xf32>
      %97 = arith.mulf %96, %95 : vector<2x256xf32>
      %98 = arith.addf %93, %97 : vector<2x256xf32>
      %c42 = arith.constant 42 : index
      %99 = memref.load %arg4[%c42] : memref<98xf32, #tpu.memory_space<smem>>
      %c0_56 = arith.constant 0 : index
      %c96 = arith.constant 96 : index
      %100 = vector.load %arg8[%c0_56, %c96] : memref<2x358xf32, #tpu.memory_space<vmem>>, vector<2x256xf32>
      %101 = vector.broadcast %99 : f32 to vector<2x256xf32>
      %102 = arith.mulf %101, %100 : vector<2x256xf32>
      %103 = arith.addf %98, %102 : vector<2x256xf32>
      %c91 = arith.constant 91 : index
      %104 = memref.load %arg4[%c91] : memref<98xf32, #tpu.memory_space<smem>>
      %c0_57 = arith.constant 0 : index
      %c96_58 = arith.constant 96 : index
      %105 = vector.load %arg9[%c0_57, %c96_58] : memref<2x358xf32, #tpu.memory_space<vmem>>, vector<2x256xf32>
      %106 = vector.broadcast %104 : f32 to vector<2x256xf32>
      %107 = arith.mulf %106, %105 : vector<2x256xf32>
      %108 = arith.addf %103, %107 : vector<2x256xf32>
      %109 = vector.broadcast %37 : vector<1x256xf32> to vector<2x256xf32>
      %110 = arith.mulf %109, %108 : vector<2x256xf32>
      %111 = arith.addf %36, %110 : vector<2x256xf32>
      %c1_59 = arith.constant 1 : index
      %c0_60 = arith.constant 0 : index
      %112 = vector.load %arg3[%c1_59, %c0_60] : memref<7x256xf32, #tpu.memory_space<vmem>>, vector<1x256xf32>
      %cst_61 = arith.constant 0.000000e+00 : f32
      %113 = vector.broadcast %cst_61 : f32 to vector<2x256xf32>
      %c1_62 = arith.constant 1 : index
      %114 = memref.load %arg4[%c1_62] : memref<98xf32, #tpu.memory_space<smem>>
      %c0_63 = arith.constant 0 : index
      %c1_64 = arith.constant 1 : index
      %115 = vector.load %arg8[%c0_63, %c1_64] : memref<2x358xf32, #tpu.memory_space<vmem>>, vector<2x256xf32>
      %116 = vector.broadcast %114 : f32 to vector<2x256xf32>
      %117 = arith.mulf %116, %115 : vector<2x256xf32>
      %118 = arith.addf %113, %117 : vector<2x256xf32>
      %c50 = arith.constant 50 : index
      %119 = memref.load %arg4[%c50] : memref<98xf32, #tpu.memory_space<smem>>
      %c0_65 = arith.constant 0 : index
      %c1_66 = arith.constant 1 : index
      %120 = vector.load %arg9[%c0_65, %c1_66] : memref<2x358xf32, #tpu.memory_space<vmem>>, vector<2x256xf32>
      %121 = vector.broadcast %119 : f32 to vector<2x256xf32>
      %122 = arith.mulf %121, %120 : vector<2x256xf32>
      %123 = arith.addf %118, %122 : vector<2x256xf32>
      %c8 = arith.constant 8 : index
      %124 = memref.load %arg4[%c8] : memref<98xf32, #tpu.memory_space<smem>>
      %c0_67 = arith.constant 0 : index
      %c17 = arith.constant 17 : index
      %125 = vector.load %arg8[%c0_67, %c17] : memref<2x358xf32, #tpu.memory_space<vmem>>, vector<2x256xf32>
      %126 = vector.broadcast %124 : f32 to vector<2x256xf32>
      %127 = arith.mulf %126, %125 : vector<2x256xf32>
      %128 = arith.addf %123, %127 : vector<2x256xf32>
      %c57 = arith.constant 57 : index
      %129 = memref.load %arg4[%c57] : memref<98xf32, #tpu.memory_space<smem>>
      %c0_68 = arith.constant 0 : index
      %c17_69 = arith.constant 17 : index
      %130 = vector.load %arg9[%c0_68, %c17_69] : memref<2x358xf32, #tpu.memory_space<vmem>>, vector<2x256xf32>
      %131 = vector.broadcast %129 : f32 to vector<2x256xf32>
      %132 = arith.mulf %131, %130 : vector<2x256xf32>
      %133 = arith.addf %128, %132 : vector<2x256xf32>
      %c15 = arith.constant 15 : index
      %134 = memref.load %arg4[%c15] : memref<98xf32, #tpu.memory_space<smem>>
      %c0_70 = arith.constant 0 : index
      %c33 = arith.constant 33 : index
      %135 = vector.load %arg8[%c0_70, %c33] : memref<2x358xf32, #tpu.memory_space<vmem>>, vector<2x256xf32>
      %136 = vector.broadcast %134 : f32 to vector<2x256xf32>
      %137 = arith.mulf %136, %135 : vector<2x256xf32>
      %138 = arith.addf %133, %137 : vector<2x256xf32>
      %c64_71 = arith.constant 64 : index
      %139 = memref.load %arg4[%c64_71] : memref<98xf32, #tpu.memory_space<smem>>
      %c0_72 = arith.constant 0 : index
      %c33_73 = arith.constant 33 : index
      %140 = vector.load %arg9[%c0_72, %c33_73] : memref<2x358xf32, #tpu.memory_space<vmem>>, vector<2x256xf32>
      %141 = vector.broadcast %139 : f32 to vector<2x256xf32>
      %142 = arith.mulf %141, %140 : vector<2x256xf32>
      %143 = arith.addf %138, %142 : vector<2x256xf32>
      %c22 = arith.constant 22 : index
      %144 = memref.load %arg4[%c22] : memref<98xf32, #tpu.memory_space<smem>>
      %c0_74 = arith.constant 0 : index
      %c49_75 = arith.constant 49 : index
      %145 = vector.load %arg8[%c0_74, %c49_75] : memref<2x358xf32, #tpu.memory_space<vmem>>, vector<2x256xf32>
      %146 = vector.broadcast %144 : f32 to vector<2x256xf32>
      %147 = arith.mulf %146, %145 : vector<2x256xf32>
      %148 = arith.addf %143, %147 : vector<2x256xf32>
      %c71 = arith.constant 71 : index
      %149 = memref.load %arg4[%c71] : memref<98xf32, #tpu.memory_space<smem>>
      %c0_76 = arith.constant 0 : index
      %c49_77 = arith.constant 49 : index
      %150 = vector.load %arg9[%c0_76, %c49_77] : memref<2x358xf32, #tpu.memory_space<vmem>>, vector<2x256xf32>
      %151 = vector.broadcast %149 : f32 to vector<2x256xf32>
      %152 = arith.mulf %151, %150 : vector<2x256xf32>
      %153 = arith.addf %148, %152 : vector<2x256xf32>
      %c29 = arith.constant 29 : index
      %154 = memref.load %arg4[%c29] : memref<98xf32, #tpu.memory_space<smem>>
      %c0_78 = arith.constant 0 : index
      %c65 = arith.constant 65 : index
      %155 = vector.load %arg8[%c0_78, %c65] : memref<2x358xf32, #tpu.memory_space<vmem>>, vector<2x256xf32>
      %156 = vector.broadcast %154 : f32 to vector<2x256xf32>
      %157 = arith.mulf %156, %155 : vector<2x256xf32>
      %158 = arith.addf %153, %157 : vector<2x256xf32>
      %c78 = arith.constant 78 : index
      %159 = memref.load %arg4[%c78] : memref<98xf32, #tpu.memory_space<smem>>
      %c0_79 = arith.constant 0 : index
      %c65_80 = arith.constant 65 : index
      %160 = vector.load %arg9[%c0_79, %c65_80] : memref<2x358xf32, #tpu.memory_space<vmem>>, vector<2x256xf32>
      %161 = vector.broadcast %159 : f32 to vector<2x256xf32>
      %162 = arith.mulf %161, %160 : vector<2x256xf32>
      %163 = arith.addf %158, %162 : vector<2x256xf32>
      %c36 = arith.constant 36 : index
      %164 = memref.load %arg4[%c36] : memref<98xf32, #tpu.memory_space<smem>>
      %c0_81 = arith.constant 0 : index
      %c81 = arith.constant 81 : index
      %165 = vector.load %arg8[%c0_81, %c81] : memref<2x358xf32, #tpu.memory_space<vmem>>, vector<2x256xf32>
      %166 = vector.broadcast %164 : f32 to vector<2x256xf32>
      %167 = arith.mulf %166, %165 : vector<2x256xf32>
      %168 = arith.addf %163, %167 : vector<2x256xf32>
      %c85 = arith.constant 85 : index
      %169 = memref.load %arg4[%c85] : memref<98xf32, #tpu.memory_space<smem>>
      %c0_82 = arith.constant 0 : index
      %c81_83 = arith.constant 81 : index
      %170 = vector.load %arg9[%c0_82, %c81_83] : memref<2x358xf32, #tpu.memory_space<vmem>>, vector<2x256xf32>
      %171 = vector.broadcast %169 : f32 to vector<2x256xf32>
      %172 = arith.mulf %171, %170 : vector<2x256xf32>
      %173 = arith.addf %168, %172 : vector<2x256xf32>
      %c43 = arith.constant 43 : index
      %174 = memref.load %arg4[%c43] : memref<98xf32, #tpu.memory_space<smem>>
      %c0_84 = arith.constant 0 : index
      %c97 = arith.constant 97 : index
      %175 = vector.load %arg8[%c0_84, %c97] : memref<2x358xf32, #tpu.memory_space<vmem>>, vector<2x256xf32>
      %176 = vector.broadcast %174 : f32 to vector<2x256xf32>
      %177 = arith.mulf %176, %175 : vector<2x256xf32>
      %178 = arith.addf %173, %177 : vector<2x256xf32>
      %c92 = arith.constant 92 : index
      %179 = memref.load %arg4[%c92] : memref<98xf32, #tpu.memory_space<smem>>
      %c0_85 = arith.constant 0 : index
      %c97_86 = arith.constant 97 : index
      %180 = vector.load %arg9[%c0_85, %c97_86] : memref<2x358xf32, #tpu.memory_space<vmem>>, vector<2x256xf32>
      %181 = vector.broadcast %179 : f32 to vector<2x256xf32>
      %182 = arith.mulf %181, %180 : vector<2x256xf32>
      %183 = arith.addf %178, %182 : vector<2x256xf32>
      %184 = vector.broadcast %112 : vector<1x256xf32> to vector<2x256xf32>
      %185 = arith.mulf %184, %183 : vector<2x256xf32>
      %186 = arith.addf %111, %185 : vector<2x256xf32>
      %c2_87 = arith.constant 2 : index
      %c0_88 = arith.constant 0 : index
      %187 = vector.load %arg3[%c2_87, %c0_88] : memref<7x256xf32, #tpu.memory_space<vmem>>, vector<1x256xf32>
      %cst_89 = arith.constant 0.000000e+00 : f32
      %188 = vector.broadcast %cst_89 : f32 to vector<2x256xf32>
      %c2_90 = arith.constant 2 : index
      %189 = memref.load %arg4[%c2_90] : memref<98xf32, #tpu.memory_space<smem>>
      %c0_91 = arith.constant 0 : index
      %c2_92 = arith.constant 2 : index
      %190 = vector.load %arg8[%c0_91, %c2_92] : memref<2x358xf32, #tpu.memory_space<vmem>>, vector<2x256xf32>
      %191 = vector.broadcast %189 : f32 to vector<2x256xf32>
      %192 = arith.mulf %191, %190 : vector<2x256xf32>
      %193 = arith.addf %188, %192 : vector<2x256xf32>
      %c51_93 = arith.constant 51 : index
      %194 = memref.load %arg4[%c51_93] : memref<98xf32, #tpu.memory_space<smem>>
      %c0_94 = arith.constant 0 : index
      %c2_95 = arith.constant 2 : index
      %195 = vector.load %arg9[%c0_94, %c2_95] : memref<2x358xf32, #tpu.memory_space<vmem>>, vector<2x256xf32>
      %196 = vector.broadcast %194 : f32 to vector<2x256xf32>
      %197 = arith.mulf %196, %195 : vector<2x256xf32>
      %198 = arith.addf %193, %197 : vector<2x256xf32>
      %c9 = arith.constant 9 : index
      %199 = memref.load %arg4[%c9] : memref<98xf32, #tpu.memory_space<smem>>
      %c0_96 = arith.constant 0 : index
      %c18 = arith.constant 18 : index
      %200 = vector.load %arg8[%c0_96, %c18] : memref<2x358xf32, #tpu.memory_space<vmem>>, vector<2x256xf32>
      %201 = vector.broadcast %199 : f32 to vector<2x256xf32>
      %202 = arith.mulf %201, %200 : vector<2x256xf32>
      %203 = arith.addf %198, %202 : vector<2x256xf32>
      %c58 = arith.constant 58 : index
      %204 = memref.load %arg4[%c58] : memref<98xf32, #tpu.memory_space<smem>>
      %c0_97 = arith.constant 0 : index
      %c18_98 = arith.constant 18 : index
      %205 = vector.load %arg9[%c0_97, %c18_98] : memref<2x358xf32, #tpu.memory_space<vmem>>, vector<2x256xf32>
      %206 = vector.broadcast %204 : f32 to vector<2x256xf32>
      %207 = arith.mulf %206, %205 : vector<2x256xf32>
      %208 = arith.addf %203, %207 : vector<2x256xf32>
      %c16_99 = arith.constant 16 : index
      %209 = memref.load %arg4[%c16_99] : memref<98xf32, #tpu.memory_space<smem>>
      %c0_100 = arith.constant 0 : index
      %c34 = arith.constant 34 : index
      %210 = vector.load %arg8[%c0_100, %c34] : memref<2x358xf32, #tpu.memory_space<vmem>>, vector<2x256xf32>
      %211 = vector.broadcast %209 : f32 to vector<2x256xf32>
      %212 = arith.mulf %211, %210 : vector<2x256xf32>
      %213 = arith.addf %208, %212 : vector<2x256xf32>
      %c65_101 = arith.constant 65 : index
      %214 = memref.load %arg4[%c65_101] : memref<98xf32, #tpu.memory_space<smem>>
      %c0_102 = arith.constant 0 : index
      %c34_103 = arith.constant 34 : index
      %215 = vector.load %arg9[%c0_102, %c34_103] : memref<2x358xf32, #tpu.memory_space<vmem>>, vector<2x256xf32>
      %216 = vector.broadcast %214 : f32 to vector<2x256xf32>
      %217 = arith.mulf %216, %215 : vector<2x256xf32>
      %218 = arith.addf %213, %217 : vector<2x256xf32>
      %c23 = arith.constant 23 : index
      %219 = memref.load %arg4[%c23] : memref<98xf32, #tpu.memory_space<smem>>
      %c0_104 = arith.constant 0 : index
      %c50_105 = arith.constant 50 : index
      %220 = vector.load %arg8[%c0_104, %c50_105] : memref<2x358xf32, #tpu.memory_space<vmem>>, vector<2x256xf32>
      %221 = vector.broadcast %219 : f32 to vector<2x256xf32>
      %222 = arith.mulf %221, %220 : vector<2x256xf32>
      %223 = arith.addf %218, %222 : vector<2x256xf32>
      %c72 = arith.constant 72 : index
      %224 = memref.load %arg4[%c72] : memref<98xf32, #tpu.memory_space<smem>>
      %c0_106 = arith.constant 0 : index
      %c50_107 = arith.constant 50 : index
      %225 = vector.load %arg9[%c0_106, %c50_107] : memref<2x358xf32, #tpu.memory_space<vmem>>, vector<2x256xf32>
      %226 = vector.broadcast %224 : f32 to vector<2x256xf32>
      %227 = arith.mulf %226, %225 : vector<2x256xf32>
      %228 = arith.addf %223, %227 : vector<2x256xf32>
      %c30 = arith.constant 30 : index
      %229 = memref.load %arg4[%c30] : memref<98xf32, #tpu.memory_space<smem>>
      %c0_108 = arith.constant 0 : index
      %c66 = arith.constant 66 : index
      %230 = vector.load %arg8[%c0_108, %c66] : memref<2x358xf32, #tpu.memory_space<vmem>>, vector<2x256xf32>
      %231 = vector.broadcast %229 : f32 to vector<2x256xf32>
      %232 = arith.mulf %231, %230 : vector<2x256xf32>
      %233 = arith.addf %228, %232 : vector<2x256xf32>
      %c79 = arith.constant 79 : index
      %234 = memref.load %arg4[%c79] : memref<98xf32, #tpu.memory_space<smem>>
      %c0_109 = arith.constant 0 : index
      %c66_110 = arith.constant 66 : index
      %235 = vector.load %arg9[%c0_109, %c66_110] : memref<2x358xf32, #tpu.memory_space<vmem>>, vector<2x256xf32>
      %236 = vector.broadcast %234 : f32 to vector<2x256xf32>
      %237 = arith.mulf %236, %235 : vector<2x256xf32>
      %238 = arith.addf %233, %237 : vector<2x256xf32>
      %c37 = arith.constant 37 : index
      %239 = memref.load %arg4[%c37] : memref<98xf32, #tpu.memory_space<smem>>
      %c0_111 = arith.constant 0 : index
      %c82 = arith.constant 82 : index
      %240 = vector.load %arg8[%c0_111, %c82] : memref<2x358xf32, #tpu.memory_space<vmem>>, vector<2x256xf32>
      %241 = vector.broadcast %239 : f32 to vector<2x256xf32>
      %242 = arith.mulf %241, %240 : vector<2x256xf32>
      %243 = arith.addf %238, %242 : vector<2x256xf32>
      %c86 = arith.constant 86 : index
      %244 = memref.load %arg4[%c86] : memref<98xf32, #tpu.memory_space<smem>>
      %c0_112 = arith.constant 0 : index
      %c82_113 = arith.constant 82 : index
      %245 = vector.load %arg9[%c0_112, %c82_113] : memref<2x358xf32, #tpu.memory_space<vmem>>, vector<2x256xf32>
      %246 = vector.broadcast %244 : f32 to vector<2x256xf32>
      %247 = arith.mulf %246, %245 : vector<2x256xf32>
      %248 = arith.addf %243, %247 : vector<2x256xf32>
      %c44 = arith.constant 44 : index
      %249 = memref.load %arg4[%c44] : memref<98xf32, #tpu.memory_space<smem>>
      %c0_114 = arith.constant 0 : index
      %c98 = arith.constant 98 : index
      %250 = vector.load %arg8[%c0_114, %c98] : memref<2x358xf32, #tpu.memory_space<vmem>>, vector<2x256xf32>
      %251 = vector.broadcast %249 : f32 to vector<2x256xf32>
      %252 = arith.mulf %251, %250 : vector<2x256xf32>
      %253 = arith.addf %248, %252 : vector<2x256xf32>
      %c93 = arith.constant 93 : index
      %254 = memref.load %arg4[%c93] : memref<98xf32, #tpu.memory_space<smem>>
      %c0_115 = arith.constant 0 : index
      %c98_116 = arith.constant 98 : index
      %255 = vector.load %arg9[%c0_115, %c98_116] : memref<2x358xf32, #tpu.memory_space<vmem>>, vector<2x256xf32>
      %256 = vector.broadcast %254 : f32 to vector<2x256xf32>
      %257 = arith.mulf %256, %255 : vector<2x256xf32>
      %258 = arith.addf %253, %257 : vector<2x256xf32>
      %259 = vector.broadcast %187 : vector<1x256xf32> to vector<2x256xf32>
      %260 = arith.mulf %259, %258 : vector<2x256xf32>
      %261 = arith.addf %186, %260 : vector<2x256xf32>
      %c3_117 = arith.constant 3 : index
      %c0_118 = arith.constant 0 : index
      %262 = vector.load %arg3[%c3_117, %c0_118] : memref<7x256xf32, #tpu.memory_space<vmem>>, vector<1x256xf32>
      %cst_119 = arith.constant 0.000000e+00 : f32
      %263 = vector.broadcast %cst_119 : f32 to vector<2x256xf32>
      %c3_120 = arith.constant 3 : index
      %264 = memref.load %arg4[%c3_120] : memref<98xf32, #tpu.memory_space<smem>>
      %c0_121 = arith.constant 0 : index
      %c3_122 = arith.constant 3 : index
      %265 = vector.load %arg8[%c0_121, %c3_122] : memref<2x358xf32, #tpu.memory_space<vmem>>, vector<2x256xf32>
      %266 = vector.broadcast %264 : f32 to vector<2x256xf32>
      %267 = arith.mulf %266, %265 : vector<2x256xf32>
      %268 = arith.addf %263, %267 : vector<2x256xf32>
      %c52 = arith.constant 52 : index
      %269 = memref.load %arg4[%c52] : memref<98xf32, #tpu.memory_space<smem>>
      %c0_123 = arith.constant 0 : index
      %c3_124 = arith.constant 3 : index
      %270 = vector.load %arg9[%c0_123, %c3_124] : memref<2x358xf32, #tpu.memory_space<vmem>>, vector<2x256xf32>
      %271 = vector.broadcast %269 : f32 to vector<2x256xf32>
      %272 = arith.mulf %271, %270 : vector<2x256xf32>
      %273 = arith.addf %268, %272 : vector<2x256xf32>
      %c10 = arith.constant 10 : index
      %274 = memref.load %arg4[%c10] : memref<98xf32, #tpu.memory_space<smem>>
      %c0_125 = arith.constant 0 : index
      %c19 = arith.constant 19 : index
      %275 = vector.load %arg8[%c0_125, %c19] : memref<2x358xf32, #tpu.memory_space<vmem>>, vector<2x256xf32>
      %276 = vector.broadcast %274 : f32 to vector<2x256xf32>
      %277 = arith.mulf %276, %275 : vector<2x256xf32>
      %278 = arith.addf %273, %277 : vector<2x256xf32>
      %c59 = arith.constant 59 : index
      %279 = memref.load %arg4[%c59] : memref<98xf32, #tpu.memory_space<smem>>
      %c0_126 = arith.constant 0 : index
      %c19_127 = arith.constant 19 : index
      %280 = vector.load %arg9[%c0_126, %c19_127] : memref<2x358xf32, #tpu.memory_space<vmem>>, vector<2x256xf32>
      %281 = vector.broadcast %279 : f32 to vector<2x256xf32>
      %282 = arith.mulf %281, %280 : vector<2x256xf32>
      %283 = arith.addf %278, %282 : vector<2x256xf32>
      %c17_128 = arith.constant 17 : index
      %284 = memref.load %arg4[%c17_128] : memref<98xf32, #tpu.memory_space<smem>>
      %c0_129 = arith.constant 0 : index
      %c35_130 = arith.constant 35 : index
      %285 = vector.load %arg8[%c0_129, %c35_130] : memref<2x358xf32, #tpu.memory_space<vmem>>, vector<2x256xf32>
      %286 = vector.broadcast %284 : f32 to vector<2x256xf32>
      %287 = arith.mulf %286, %285 : vector<2x256xf32>
      %288 = arith.addf %283, %287 : vector<2x256xf32>
      %c66_131 = arith.constant 66 : index
      %289 = memref.load %arg4[%c66_131] : memref<98xf32, #tpu.memory_space<smem>>
      %c0_132 = arith.constant 0 : index
      %c35_133 = arith.constant 35 : index
      %290 = vector.load %arg9[%c0_132, %c35_133] : memref<2x358xf32, #tpu.memory_space<vmem>>, vector<2x256xf32>
      %291 = vector.broadcast %289 : f32 to vector<2x256xf32>
      %292 = arith.mulf %291, %290 : vector<2x256xf32>
      %293 = arith.addf %288, %292 : vector<2x256xf32>
      %c24 = arith.constant 24 : index
      %294 = memref.load %arg4[%c24] : memref<98xf32, #tpu.memory_space<smem>>
      %c0_134 = arith.constant 0 : index
      %c51_135 = arith.constant 51 : index
      %295 = vector.load %arg8[%c0_134, %c51_135] : memref<2x358xf32, #tpu.memory_space<vmem>>, vector<2x256xf32>
      %296 = vector.broadcast %294 : f32 to vector<2x256xf32>
      %297 = arith.mulf %296, %295 : vector<2x256xf32>
      %298 = arith.addf %293, %297 : vector<2x256xf32>
      %c73 = arith.constant 73 : index
      %299 = memref.load %arg4[%c73] : memref<98xf32, #tpu.memory_space<smem>>
      %c0_136 = arith.constant 0 : index
      %c51_137 = arith.constant 51 : index
      %300 = vector.load %arg9[%c0_136, %c51_137] : memref<2x358xf32, #tpu.memory_space<vmem>>, vector<2x256xf32>
      %301 = vector.broadcast %299 : f32 to vector<2x256xf32>
      %302 = arith.mulf %301, %300 : vector<2x256xf32>
      %303 = arith.addf %298, %302 : vector<2x256xf32>
      %c31 = arith.constant 31 : index
      %304 = memref.load %arg4[%c31] : memref<98xf32, #tpu.memory_space<smem>>
      %c0_138 = arith.constant 0 : index
      %c67 = arith.constant 67 : index
      %305 = vector.load %arg8[%c0_138, %c67] : memref<2x358xf32, #tpu.memory_space<vmem>>, vector<2x256xf32>
      %306 = vector.broadcast %304 : f32 to vector<2x256xf32>
      %307 = arith.mulf %306, %305 : vector<2x256xf32>
      %308 = arith.addf %303, %307 : vector<2x256xf32>
      %c80_139 = arith.constant 80 : index
      %309 = memref.load %arg4[%c80_139] : memref<98xf32, #tpu.memory_space<smem>>
      %c0_140 = arith.constant 0 : index
      %c67_141 = arith.constant 67 : index
      %310 = vector.load %arg9[%c0_140, %c67_141] : memref<2x358xf32, #tpu.memory_space<vmem>>, vector<2x256xf32>
      %311 = vector.broadcast %309 : f32 to vector<2x256xf32>
      %312 = arith.mulf %311, %310 : vector<2x256xf32>
      %313 = arith.addf %308, %312 : vector<2x256xf32>
      %c38 = arith.constant 38 : index
      %314 = memref.load %arg4[%c38] : memref<98xf32, #tpu.memory_space<smem>>
      %c0_142 = arith.constant 0 : index
      %c83 = arith.constant 83 : index
      %315 = vector.load %arg8[%c0_142, %c83] : memref<2x358xf32, #tpu.memory_space<vmem>>, vector<2x256xf32>
      %316 = vector.broadcast %314 : f32 to vector<2x256xf32>
      %317 = arith.mulf %316, %315 : vector<2x256xf32>
      %318 = arith.addf %313, %317 : vector<2x256xf32>
      %c87 = arith.constant 87 : index
      %319 = memref.load %arg4[%c87] : memref<98xf32, #tpu.memory_space<smem>>
      %c0_143 = arith.constant 0 : index
      %c83_144 = arith.constant 83 : index
      %320 = vector.load %arg9[%c0_143, %c83_144] : memref<2x358xf32, #tpu.memory_space<vmem>>, vector<2x256xf32>
      %321 = vector.broadcast %319 : f32 to vector<2x256xf32>
      %322 = arith.mulf %321, %320 : vector<2x256xf32>
      %323 = arith.addf %318, %322 : vector<2x256xf32>
      %c45 = arith.constant 45 : index
      %324 = memref.load %arg4[%c45] : memref<98xf32, #tpu.memory_space<smem>>
      %c0_145 = arith.constant 0 : index
      %c99 = arith.constant 99 : index
      %325 = vector.load %arg8[%c0_145, %c99] : memref<2x358xf32, #tpu.memory_space<vmem>>, vector<2x256xf32>
      %326 = vector.broadcast %324 : f32 to vector<2x256xf32>
      %327 = arith.mulf %326, %325 : vector<2x256xf32>
      %328 = arith.addf %323, %327 : vector<2x256xf32>
      %c94 = arith.constant 94 : index
      %329 = memref.load %arg4[%c94] : memref<98xf32, #tpu.memory_space<smem>>
      %c0_146 = arith.constant 0 : index
      %c99_147 = arith.constant 99 : index
      %330 = vector.load %arg9[%c0_146, %c99_147] : memref<2x358xf32, #tpu.memory_space<vmem>>, vector<2x256xf32>
      %331 = vector.broadcast %329 : f32 to vector<2x256xf32>
      %332 = arith.mulf %331, %330 : vector<2x256xf32>
      %333 = arith.addf %328, %332 : vector<2x256xf32>
      %334 = vector.broadcast %262 : vector<1x256xf32> to vector<2x256xf32>
      %335 = arith.mulf %334, %333 : vector<2x256xf32>
      %336 = arith.addf %261, %335 : vector<2x256xf32>
      %c4 = arith.constant 4 : index
      %c0_148 = arith.constant 0 : index
      %337 = vector.load %arg3[%c4, %c0_148] : memref<7x256xf32, #tpu.memory_space<vmem>>, vector<1x256xf32>
      %cst_149 = arith.constant 0.000000e+00 : f32
      %338 = vector.broadcast %cst_149 : f32 to vector<2x256xf32>
      %c4_150 = arith.constant 4 : index
      %339 = memref.load %arg4[%c4_150] : memref<98xf32, #tpu.memory_space<smem>>
      %c0_151 = arith.constant 0 : index
      %c4_152 = arith.constant 4 : index
      %340 = vector.load %arg8[%c0_151, %c4_152] : memref<2x358xf32, #tpu.memory_space<vmem>>, vector<2x256xf32>
      %341 = vector.broadcast %339 : f32 to vector<2x256xf32>
      %342 = arith.mulf %341, %340 : vector<2x256xf32>
      %343 = arith.addf %338, %342 : vector<2x256xf32>
      %c53 = arith.constant 53 : index
      %344 = memref.load %arg4[%c53] : memref<98xf32, #tpu.memory_space<smem>>
      %c0_153 = arith.constant 0 : index
      %c4_154 = arith.constant 4 : index
      %345 = vector.load %arg9[%c0_153, %c4_154] : memref<2x358xf32, #tpu.memory_space<vmem>>, vector<2x256xf32>
      %346 = vector.broadcast %344 : f32 to vector<2x256xf32>
      %347 = arith.mulf %346, %345 : vector<2x256xf32>
      %348 = arith.addf %343, %347 : vector<2x256xf32>
      %c11 = arith.constant 11 : index
      %349 = memref.load %arg4[%c11] : memref<98xf32, #tpu.memory_space<smem>>
      %c0_155 = arith.constant 0 : index
      %c20 = arith.constant 20 : index
      %350 = vector.load %arg8[%c0_155, %c20] : memref<2x358xf32, #tpu.memory_space<vmem>>, vector<2x256xf32>
      %351 = vector.broadcast %349 : f32 to vector<2x256xf32>
      %352 = arith.mulf %351, %350 : vector<2x256xf32>
      %353 = arith.addf %348, %352 : vector<2x256xf32>
      %c60 = arith.constant 60 : index
      %354 = memref.load %arg4[%c60] : memref<98xf32, #tpu.memory_space<smem>>
      %c0_156 = arith.constant 0 : index
      %c20_157 = arith.constant 20 : index
      %355 = vector.load %arg9[%c0_156, %c20_157] : memref<2x358xf32, #tpu.memory_space<vmem>>, vector<2x256xf32>
      %356 = vector.broadcast %354 : f32 to vector<2x256xf32>
      %357 = arith.mulf %356, %355 : vector<2x256xf32>
      %358 = arith.addf %353, %357 : vector<2x256xf32>
      %c18_158 = arith.constant 18 : index
      %359 = memref.load %arg4[%c18_158] : memref<98xf32, #tpu.memory_space<smem>>
      %c0_159 = arith.constant 0 : index
      %c36_160 = arith.constant 36 : index
      %360 = vector.load %arg8[%c0_159, %c36_160] : memref<2x358xf32, #tpu.memory_space<vmem>>, vector<2x256xf32>
      %361 = vector.broadcast %359 : f32 to vector<2x256xf32>
      %362 = arith.mulf %361, %360 : vector<2x256xf32>
      %363 = arith.addf %358, %362 : vector<2x256xf32>
      %c67_161 = arith.constant 67 : index
      %364 = memref.load %arg4[%c67_161] : memref<98xf32, #tpu.memory_space<smem>>
      %c0_162 = arith.constant 0 : index
      %c36_163 = arith.constant 36 : index
      %365 = vector.load %arg9[%c0_162, %c36_163] : memref<2x358xf32, #tpu.memory_space<vmem>>, vector<2x256xf32>
      %366 = vector.broadcast %364 : f32 to vector<2x256xf32>
      %367 = arith.mulf %366, %365 : vector<2x256xf32>
      %368 = arith.addf %363, %367 : vector<2x256xf32>
      %c25 = arith.constant 25 : index
      %369 = memref.load %arg4[%c25] : memref<98xf32, #tpu.memory_space<smem>>
      %c0_164 = arith.constant 0 : index
      %c52_165 = arith.constant 52 : index
      %370 = vector.load %arg8[%c0_164, %c52_165] : memref<2x358xf32, #tpu.memory_space<vmem>>, vector<2x256xf32>
      %371 = vector.broadcast %369 : f32 to vector<2x256xf32>
      %372 = arith.mulf %371, %370 : vector<2x256xf32>
      %373 = arith.addf %368, %372 : vector<2x256xf32>
      %c74 = arith.constant 74 : index
      %374 = memref.load %arg4[%c74] : memref<98xf32, #tpu.memory_space<smem>>
      %c0_166 = arith.constant 0 : index
      %c52_167 = arith.constant 52 : index
      %375 = vector.load %arg9[%c0_166, %c52_167] : memref<2x358xf32, #tpu.memory_space<vmem>>, vector<2x256xf32>
      %376 = vector.broadcast %374 : f32 to vector<2x256xf32>
      %377 = arith.mulf %376, %375 : vector<2x256xf32>
      %378 = arith.addf %373, %377 : vector<2x256xf32>
      %c32_168 = arith.constant 32 : index
      %379 = memref.load %arg4[%c32_168] : memref<98xf32, #tpu.memory_space<smem>>
      %c0_169 = arith.constant 0 : index
      %c68 = arith.constant 68 : index
      %380 = vector.load %arg8[%c0_169, %c68] : memref<2x358xf32, #tpu.memory_space<vmem>>, vector<2x256xf32>
      %381 = vector.broadcast %379 : f32 to vector<2x256xf32>
      %382 = arith.mulf %381, %380 : vector<2x256xf32>
      %383 = arith.addf %378, %382 : vector<2x256xf32>
      %c81_170 = arith.constant 81 : index
      %384 = memref.load %arg4[%c81_170] : memref<98xf32, #tpu.memory_space<smem>>
      %c0_171 = arith.constant 0 : index
      %c68_172 = arith.constant 68 : index
      %385 = vector.load %arg9[%c0_171, %c68_172] : memref<2x358xf32, #tpu.memory_space<vmem>>, vector<2x256xf32>
      %386 = vector.broadcast %384 : f32 to vector<2x256xf32>
      %387 = arith.mulf %386, %385 : vector<2x256xf32>
      %388 = arith.addf %383, %387 : vector<2x256xf32>
      %c39 = arith.constant 39 : index
      %389 = memref.load %arg4[%c39] : memref<98xf32, #tpu.memory_space<smem>>
      %c0_173 = arith.constant 0 : index
      %c84_174 = arith.constant 84 : index
      %390 = vector.load %arg8[%c0_173, %c84_174] : memref<2x358xf32, #tpu.memory_space<vmem>>, vector<2x256xf32>
      %391 = vector.broadcast %389 : f32 to vector<2x256xf32>
      %392 = arith.mulf %391, %390 : vector<2x256xf32>
      %393 = arith.addf %388, %392 : vector<2x256xf32>
      %c88 = arith.constant 88 : index
      %394 = memref.load %arg4[%c88] : memref<98xf32, #tpu.memory_space<smem>>
      %c0_175 = arith.constant 0 : index
      %c84_176 = arith.constant 84 : index
      %395 = vector.load %arg9[%c0_175, %c84_176] : memref<2x358xf32, #tpu.memory_space<vmem>>, vector<2x256xf32>
      %396 = vector.broadcast %394 : f32 to vector<2x256xf32>
      %397 = arith.mulf %396, %395 : vector<2x256xf32>
      %398 = arith.addf %393, %397 : vector<2x256xf32>
      %c46 = arith.constant 46 : index
      %399 = memref.load %arg4[%c46] : memref<98xf32, #tpu.memory_space<smem>>
      %c0_177 = arith.constant 0 : index
      %c100 = arith.constant 100 : index
      %400 = vector.load %arg8[%c0_177, %c100] : memref<2x358xf32, #tpu.memory_space<vmem>>, vector<2x256xf32>
      %401 = vector.broadcast %399 : f32 to vector<2x256xf32>
      %402 = arith.mulf %401, %400 : vector<2x256xf32>
      %403 = arith.addf %398, %402 : vector<2x256xf32>
      %c95 = arith.constant 95 : index
      %404 = memref.load %arg4[%c95] : memref<98xf32, #tpu.memory_space<smem>>
      %c0_178 = arith.constant 0 : index
      %c100_179 = arith.constant 100 : index
      %405 = vector.load %arg9[%c0_178, %c100_179] : memref<2x358xf32, #tpu.memory_space<vmem>>, vector<2x256xf32>
      %406 = vector.broadcast %404 : f32 to vector<2x256xf32>
      %407 = arith.mulf %406, %405 : vector<2x256xf32>
      %408 = arith.addf %403, %407 : vector<2x256xf32>
      %409 = vector.broadcast %337 : vector<1x256xf32> to vector<2x256xf32>
      %410 = arith.mulf %409, %408 : vector<2x256xf32>
      %411 = arith.addf %336, %410 : vector<2x256xf32>
      %c5 = arith.constant 5 : index
      %c0_180 = arith.constant 0 : index
      %412 = vector.load %arg3[%c5, %c0_180] : memref<7x256xf32, #tpu.memory_space<vmem>>, vector<1x256xf32>
      %cst_181 = arith.constant 0.000000e+00 : f32
      %413 = vector.broadcast %cst_181 : f32 to vector<2x256xf32>
      %c5_182 = arith.constant 5 : index
      %414 = memref.load %arg4[%c5_182] : memref<98xf32, #tpu.memory_space<smem>>
      %c0_183 = arith.constant 0 : index
      %c5_184 = arith.constant 5 : index
      %415 = vector.load %arg8[%c0_183, %c5_184] : memref<2x358xf32, #tpu.memory_space<vmem>>, vector<2x256xf32>
      %416 = vector.broadcast %414 : f32 to vector<2x256xf32>
      %417 = arith.mulf %416, %415 : vector<2x256xf32>
      %418 = arith.addf %413, %417 : vector<2x256xf32>
      %c54 = arith.constant 54 : index
      %419 = memref.load %arg4[%c54] : memref<98xf32, #tpu.memory_space<smem>>
      %c0_185 = arith.constant 0 : index
      %c5_186 = arith.constant 5 : index
      %420 = vector.load %arg9[%c0_185, %c5_186] : memref<2x358xf32, #tpu.memory_space<vmem>>, vector<2x256xf32>
      %421 = vector.broadcast %419 : f32 to vector<2x256xf32>
      %422 = arith.mulf %421, %420 : vector<2x256xf32>
      %423 = arith.addf %418, %422 : vector<2x256xf32>
      %c12 = arith.constant 12 : index
      %424 = memref.load %arg4[%c12] : memref<98xf32, #tpu.memory_space<smem>>
      %c0_187 = arith.constant 0 : index
      %c21_188 = arith.constant 21 : index
      %425 = vector.load %arg8[%c0_187, %c21_188] : memref<2x358xf32, #tpu.memory_space<vmem>>, vector<2x256xf32>
      %426 = vector.broadcast %424 : f32 to vector<2x256xf32>
      %427 = arith.mulf %426, %425 : vector<2x256xf32>
      %428 = arith.addf %423, %427 : vector<2x256xf32>
      %c61 = arith.constant 61 : index
      %429 = memref.load %arg4[%c61] : memref<98xf32, #tpu.memory_space<smem>>
      %c0_189 = arith.constant 0 : index
      %c21_190 = arith.constant 21 : index
      %430 = vector.load %arg9[%c0_189, %c21_190] : memref<2x358xf32, #tpu.memory_space<vmem>>, vector<2x256xf32>
      %431 = vector.broadcast %429 : f32 to vector<2x256xf32>
      %432 = arith.mulf %431, %430 : vector<2x256xf32>
      %433 = arith.addf %428, %432 : vector<2x256xf32>
      %c19_191 = arith.constant 19 : index
      %434 = memref.load %arg4[%c19_191] : memref<98xf32, #tpu.memory_space<smem>>
      %c0_192 = arith.constant 0 : index
      %c37_193 = arith.constant 37 : index
      %435 = vector.load %arg8[%c0_192, %c37_193] : memref<2x358xf32, #tpu.memory_space<vmem>>, vector<2x256xf32>
      %436 = vector.broadcast %434 : f32 to vector<2x256xf32>
      %437 = arith.mulf %436, %435 : vector<2x256xf32>
      %438 = arith.addf %433, %437 : vector<2x256xf32>
      %c68_194 = arith.constant 68 : index
      %439 = memref.load %arg4[%c68_194] : memref<98xf32, #tpu.memory_space<smem>>
      %c0_195 = arith.constant 0 : index
      %c37_196 = arith.constant 37 : index
      %440 = vector.load %arg9[%c0_195, %c37_196] : memref<2x358xf32, #tpu.memory_space<vmem>>, vector<2x256xf32>
      %441 = vector.broadcast %439 : f32 to vector<2x256xf32>
      %442 = arith.mulf %441, %440 : vector<2x256xf32>
      %443 = arith.addf %438, %442 : vector<2x256xf32>
      %c26 = arith.constant 26 : index
      %444 = memref.load %arg4[%c26] : memref<98xf32, #tpu.memory_space<smem>>
      %c0_197 = arith.constant 0 : index
      %c53_198 = arith.constant 53 : index
      %445 = vector.load %arg8[%c0_197, %c53_198] : memref<2x358xf32, #tpu.memory_space<vmem>>, vector<2x256xf32>
      %446 = vector.broadcast %444 : f32 to vector<2x256xf32>
      %447 = arith.mulf %446, %445 : vector<2x256xf32>
      %448 = arith.addf %443, %447 : vector<2x256xf32>
      %c75 = arith.constant 75 : index
      %449 = memref.load %arg4[%c75] : memref<98xf32, #tpu.memory_space<smem>>
      %c0_199 = arith.constant 0 : index
      %c53_200 = arith.constant 53 : index
      %450 = vector.load %arg9[%c0_199, %c53_200] : memref<2x358xf32, #tpu.memory_space<vmem>>, vector<2x256xf32>
      %451 = vector.broadcast %449 : f32 to vector<2x256xf32>
      %452 = arith.mulf %451, %450 : vector<2x256xf32>
      %453 = arith.addf %448, %452 : vector<2x256xf32>
      %c33_201 = arith.constant 33 : index
      %454 = memref.load %arg4[%c33_201] : memref<98xf32, #tpu.memory_space<smem>>
      %c0_202 = arith.constant 0 : index
      %c69 = arith.constant 69 : index
      %455 = vector.load %arg8[%c0_202, %c69] : memref<2x358xf32, #tpu.memory_space<vmem>>, vector<2x256xf32>
      %456 = vector.broadcast %454 : f32 to vector<2x256xf32>
      %457 = arith.mulf %456, %455 : vector<2x256xf32>
      %458 = arith.addf %453, %457 : vector<2x256xf32>
      %c82_203 = arith.constant 82 : index
      %459 = memref.load %arg4[%c82_203] : memref<98xf32, #tpu.memory_space<smem>>
      %c0_204 = arith.constant 0 : index
      %c69_205 = arith.constant 69 : index
      %460 = vector.load %arg9[%c0_204, %c69_205] : memref<2x358xf32, #tpu.memory_space<vmem>>, vector<2x256xf32>
      %461 = vector.broadcast %459 : f32 to vector<2x256xf32>
      %462 = arith.mulf %461, %460 : vector<2x256xf32>
      %463 = arith.addf %458, %462 : vector<2x256xf32>
      %c40 = arith.constant 40 : index
      %464 = memref.load %arg4[%c40] : memref<98xf32, #tpu.memory_space<smem>>
      %c0_206 = arith.constant 0 : index
      %c85_207 = arith.constant 85 : index
      %465 = vector.load %arg8[%c0_206, %c85_207] : memref<2x358xf32, #tpu.memory_space<vmem>>, vector<2x256xf32>
      %466 = vector.broadcast %464 : f32 to vector<2x256xf32>
      %467 = arith.mulf %466, %465 : vector<2x256xf32>
      %468 = arith.addf %463, %467 : vector<2x256xf32>
      %c89 = arith.constant 89 : index
      %469 = memref.load %arg4[%c89] : memref<98xf32, #tpu.memory_space<smem>>
      %c0_208 = arith.constant 0 : index
      %c85_209 = arith.constant 85 : index
      %470 = vector.load %arg9[%c0_208, %c85_209] : memref<2x358xf32, #tpu.memory_space<vmem>>, vector<2x256xf32>
      %471 = vector.broadcast %469 : f32 to vector<2x256xf32>
      %472 = arith.mulf %471, %470 : vector<2x256xf32>
      %473 = arith.addf %468, %472 : vector<2x256xf32>
      %c47 = arith.constant 47 : index
      %474 = memref.load %arg4[%c47] : memref<98xf32, #tpu.memory_space<smem>>
      %c0_210 = arith.constant 0 : index
      %c101 = arith.constant 101 : index
      %475 = vector.load %arg8[%c0_210, %c101] : memref<2x358xf32, #tpu.memory_space<vmem>>, vector<2x256xf32>
      %476 = vector.broadcast %474 : f32 to vector<2x256xf32>
      %477 = arith.mulf %476, %475 : vector<2x256xf32>
      %478 = arith.addf %473, %477 : vector<2x256xf32>
      %c96_211 = arith.constant 96 : index
      %479 = memref.load %arg4[%c96_211] : memref<98xf32, #tpu.memory_space<smem>>
      %c0_212 = arith.constant 0 : index
      %c101_213 = arith.constant 101 : index
      %480 = vector.load %arg9[%c0_212, %c101_213] : memref<2x358xf32, #tpu.memory_space<vmem>>, vector<2x256xf32>
      %481 = vector.broadcast %479 : f32 to vector<2x256xf32>
      %482 = arith.mulf %481, %480 : vector<2x256xf32>
      %483 = arith.addf %478, %482 : vector<2x256xf32>
      %484 = vector.broadcast %412 : vector<1x256xf32> to vector<2x256xf32>
      %485 = arith.mulf %484, %483 : vector<2x256xf32>
      %486 = arith.addf %411, %485 : vector<2x256xf32>
      %c6 = arith.constant 6 : index
      %c0_214 = arith.constant 0 : index
      %487 = vector.load %arg3[%c6, %c0_214] : memref<7x256xf32, #tpu.memory_space<vmem>>, vector<1x256xf32>
      %cst_215 = arith.constant 0.000000e+00 : f32
      %488 = vector.broadcast %cst_215 : f32 to vector<2x256xf32>
      %c6_216 = arith.constant 6 : index
      %489 = memref.load %arg4[%c6_216] : memref<98xf32, #tpu.memory_space<smem>>
      %c0_217 = arith.constant 0 : index
      %c6_218 = arith.constant 6 : index
      %490 = vector.load %arg8[%c0_217, %c6_218] : memref<2x358xf32, #tpu.memory_space<vmem>>, vector<2x256xf32>
      %491 = vector.broadcast %489 : f32 to vector<2x256xf32>
      %492 = arith.mulf %491, %490 : vector<2x256xf32>
      %493 = arith.addf %488, %492 : vector<2x256xf32>
      %c55 = arith.constant 55 : index
      %494 = memref.load %arg4[%c55] : memref<98xf32, #tpu.memory_space<smem>>
      %c0_219 = arith.constant 0 : index
      %c6_220 = arith.constant 6 : index
      %495 = vector.load %arg9[%c0_219, %c6_220] : memref<2x358xf32, #tpu.memory_space<vmem>>, vector<2x256xf32>
      %496 = vector.broadcast %494 : f32 to vector<2x256xf32>
      %497 = arith.mulf %496, %495 : vector<2x256xf32>
      %498 = arith.addf %493, %497 : vector<2x256xf32>
      %c13 = arith.constant 13 : index
      %499 = memref.load %arg4[%c13] : memref<98xf32, #tpu.memory_space<smem>>
      %c0_221 = arith.constant 0 : index
      %c22_222 = arith.constant 22 : index
      %500 = vector.load %arg8[%c0_221, %c22_222] : memref<2x358xf32, #tpu.memory_space<vmem>>, vector<2x256xf32>
      %501 = vector.broadcast %499 : f32 to vector<2x256xf32>
      %502 = arith.mulf %501, %500 : vector<2x256xf32>
      %503 = arith.addf %498, %502 : vector<2x256xf32>
      %c62 = arith.constant 62 : index
      %504 = memref.load %arg4[%c62] : memref<98xf32, #tpu.memory_space<smem>>
      %c0_223 = arith.constant 0 : index
      %c22_224 = arith.constant 22 : index
      %505 = vector.load %arg9[%c0_223, %c22_224] : memref<2x358xf32, #tpu.memory_space<vmem>>, vector<2x256xf32>
      %506 = vector.broadcast %504 : f32 to vector<2x256xf32>
      %507 = arith.mulf %506, %505 : vector<2x256xf32>
      %508 = arith.addf %503, %507 : vector<2x256xf32>
      %c20_225 = arith.constant 20 : index
      %509 = memref.load %arg4[%c20_225] : memref<98xf32, #tpu.memory_space<smem>>
      %c0_226 = arith.constant 0 : index
      %c38_227 = arith.constant 38 : index
      %510 = vector.load %arg8[%c0_226, %c38_227] : memref<2x358xf32, #tpu.memory_space<vmem>>, vector<2x256xf32>
      %511 = vector.broadcast %509 : f32 to vector<2x256xf32>
      %512 = arith.mulf %511, %510 : vector<2x256xf32>
      %513 = arith.addf %508, %512 : vector<2x256xf32>
      %c69_228 = arith.constant 69 : index
      %514 = memref.load %arg4[%c69_228] : memref<98xf32, #tpu.memory_space<smem>>
      %c0_229 = arith.constant 0 : index
      %c38_230 = arith.constant 38 : index
      %515 = vector.load %arg9[%c0_229, %c38_230] : memref<2x358xf32, #tpu.memory_space<vmem>>, vector<2x256xf32>
      %516 = vector.broadcast %514 : f32 to vector<2x256xf32>
      %517 = arith.mulf %516, %515 : vector<2x256xf32>
      %518 = arith.addf %513, %517 : vector<2x256xf32>
      %c27 = arith.constant 27 : index
      %519 = memref.load %arg4[%c27] : memref<98xf32, #tpu.memory_space<smem>>
      %c0_231 = arith.constant 0 : index
      %c54_232 = arith.constant 54 : index
      %520 = vector.load %arg8[%c0_231, %c54_232] : memref<2x358xf32, #tpu.memory_space<vmem>>, vector<2x256xf32>
      %521 = vector.broadcast %519 : f32 to vector<2x256xf32>
      %522 = arith.mulf %521, %520 : vector<2x256xf32>
      %523 = arith.addf %518, %522 : vector<2x256xf32>
      %c76 = arith.constant 76 : index
      %524 = memref.load %arg4[%c76] : memref<98xf32, #tpu.memory_space<smem>>
      %c0_233 = arith.constant 0 : index
      %c54_234 = arith.constant 54 : index
      %525 = vector.load %arg9[%c0_233, %c54_234] : memref<2x358xf32, #tpu.memory_space<vmem>>, vector<2x256xf32>
      %526 = vector.broadcast %524 : f32 to vector<2x256xf32>
      %527 = arith.mulf %526, %525 : vector<2x256xf32>
      %528 = arith.addf %523, %527 : vector<2x256xf32>
      %c34_235 = arith.constant 34 : index
      %529 = memref.load %arg4[%c34_235] : memref<98xf32, #tpu.memory_space<smem>>
      %c0_236 = arith.constant 0 : index
      %c70_237 = arith.constant 70 : index
      %530 = vector.load %arg8[%c0_236, %c70_237] : memref<2x358xf32, #tpu.memory_space<vmem>>, vector<2x256xf32>
      %531 = vector.broadcast %529 : f32 to vector<2x256xf32>
      %532 = arith.mulf %531, %530 : vector<2x256xf32>
      %533 = arith.addf %528, %532 : vector<2x256xf32>
      %c83_238 = arith.constant 83 : index
      %534 = memref.load %arg4[%c83_238] : memref<98xf32, #tpu.memory_space<smem>>
      %c0_239 = arith.constant 0 : index
      %c70_240 = arith.constant 70 : index
      %535 = vector.load %arg9[%c0_239, %c70_240] : memref<2x358xf32, #tpu.memory_space<vmem>>, vector<2x256xf32>
      %536 = vector.broadcast %534 : f32 to vector<2x256xf32>
      %537 = arith.mulf %536, %535 : vector<2x256xf32>
      %538 = arith.addf %533, %537 : vector<2x256xf32>
      %c41 = arith.constant 41 : index
      %539 = memref.load %arg4[%c41] : memref<98xf32, #tpu.memory_space<smem>>
      %c0_241 = arith.constant 0 : index
      %c86_242 = arith.constant 86 : index
      %540 = vector.load %arg8[%c0_241, %c86_242] : memref<2x358xf32, #tpu.memory_space<vmem>>, vector<2x256xf32>
      %541 = vector.broadcast %539 : f32 to vector<2x256xf32>
      %542 = arith.mulf %541, %540 : vector<2x256xf32>
      %543 = arith.addf %538, %542 : vector<2x256xf32>
      %c90 = arith.constant 90 : index
      %544 = memref.load %arg4[%c90] : memref<98xf32, #tpu.memory_space<smem>>
      %c0_243 = arith.constant 0 : index
      %c86_244 = arith.constant 86 : index
      %545 = vector.load %arg9[%c0_243, %c86_244] : memref<2x358xf32, #tpu.memory_space<vmem>>, vector<2x256xf32>
      %546 = vector.broadcast %544 : f32 to vector<2x256xf32>
      %547 = arith.mulf %546, %545 : vector<2x256xf32>
      %548 = arith.addf %543, %547 : vector<2x256xf32>
      %c48_245 = arith.constant 48 : index
      %549 = memref.load %arg4[%c48_245] : memref<98xf32, #tpu.memory_space<smem>>
      %c0_246 = arith.constant 0 : index
      %c102 = arith.constant 102 : index
      %550 = vector.load %arg8[%c0_246, %c102] : memref<2x358xf32, #tpu.memory_space<vmem>>, vector<2x256xf32>
      %551 = vector.broadcast %549 : f32 to vector<2x256xf32>
      %552 = arith.mulf %551, %550 : vector<2x256xf32>
      %553 = arith.addf %548, %552 : vector<2x256xf32>
      %c97_247 = arith.constant 97 : index
      %554 = memref.load %arg4[%c97_247] : memref<98xf32, #tpu.memory_space<smem>>
      %c0_248 = arith.constant 0 : index
      %c102_249 = arith.constant 102 : index
      %555 = vector.load %arg9[%c0_248, %c102_249] : memref<2x358xf32, #tpu.memory_space<vmem>>, vector<2x256xf32>
      %556 = vector.broadcast %554 : f32 to vector<2x256xf32>
      %557 = arith.mulf %556, %555 : vector<2x256xf32>
      %558 = arith.addf %553, %557 : vector<2x256xf32>
      %559 = vector.broadcast %487 : vector<1x256xf32> to vector<2x256xf32>
      %560 = arith.mulf %559, %558 : vector<2x256xf32>
      %561 = arith.addf %486, %560 : vector<2x256xf32>
      %562 = arith.negf %561 : vector<2x256xf32>
      %563 = math.exp %562 : vector<2x256xf32>
      %cst_250 = arith.constant 1.000000e+00 : f32
      %564 = vector.broadcast %cst_250 : f32 to vector<2x256xf32>
      %565 = arith.addf %564, %563 : vector<2x256xf32>
      %566 = arith.divf %564, %565 : vector<2x256xf32>
      %c0_251 = arith.constant 0 : index
      %c0_252 = arith.constant 0 : index
      %567 = vector.load %arg5[%c0_251, %c0_252] : memref<2x256xf32, #tpu.memory_space<vmem>>, vector<2x256xf32>
      tpu.vector_store %arg5[%c0_251, %c0_252], %566 {strides = array<i32>} : memref<2x256xf32, #tpu.memory_space<vmem>>, vector<2x256xf32>,
    } else {
    }
    return
  }
  func.func @transform_0(%arg0: i32, %arg1: i32) -> (i32, i32, i32) {
    %c0_i32 = arith.constant 0 : i32
    %c0_i32_0 = arith.constant 0 : i32
    return %arg0, %arg1, %c0_i32 : i32, i32, i32
  }
  func.func @transform_1(%arg0: i32, %arg1: i32) -> (i32, i32) {
    %c0_i32 = arith.constant 0 : i32
    %c0_i32_0 = arith.constant 0 : i32
    %c0_i32_1 = arith.constant 0 : i32
    return %c0_i32, %c0_i32_0 : i32, i32
  }
  func.func @transform_2(%arg0: i32, %arg1: i32) -> i32 {
    %c0_i32 = arith.constant 0 : i32
    %c0_i32_0 = arith.constant 0 : i32
    return %c0_i32 : i32
  }
  func.func @transform_3(%arg0: i32, %arg1: i32) -> (i32, i32) {
    %c0_i32 = arith.constant 0 : i32
    %c0_i32_0 = arith.constant 0 : i32
    return %arg0, %c0_i32 : i32, i32
  }
}

</mosaic_0001>

<bundles_post_ra>
// kernel: tpu_custom_call.1
= control target key start
LH: loop header
LB: loop body
LE: loop exit
PB: predicated region body
PF: predicated region fallthrough
CT: control target
= control target key end

     0   :  { %8 = vsyncpa [#allocation7], 0  ;;  %s2085_s0 = inlined_call_operand.hbm [shape: f32[2,4,256], index: 0, kind: input, shape index: {}]   ;;  %s2086_s1 = inlined_call_operand.hbm [shape: f32[7,256], index: 1, kind: input, shape index: {}]   ;;  %s2087_s2 = inlined_call_operand.vmem [shape: f32[98], index: 2, kind: input, shape index: {}]   ;;  %s2088_s3 = inlined_call_operand.hbm [shape: f32[2,256], index: 3, kind: output, shape index: {}]  }
   0x1   :  { %9 = vsyncpa [#allocation11], 0 }
   0x2   :  { %10 = vsyncpa [#allocation9], 0 }
   0x3   :  { %11 = vsyncpa [#allocation8], 0  ;;  %s16_s14 = sshll.u32 %s2085_s0, 4  ;;  %s1550_s15 = smov [#allocation6]   ;;  %s17_s14 = int_to_ptr.hbm [resolvable:$true] %s16_s14 }
   0x4   :  { %s18_s16 = sshll.u32 %s1550_s15, 4  ;;  %s30_s19 = sshll.u32 %s2086_s1, 4  ;;  %s19_s16 = int_to_ptr.vmem [resolvable:$true] %s18_s16  ;;  %s31_s19 = int_to_ptr.hbm [resolvable:$true] %s30_s19 }
   0x5   :  { %s1551_s20 = smov 128   ;;  %s1552_s21 = smov 8  }
   0x6   :  { %24 = dma.hbm_to_vmem [thread:$0]  %s17_s14, 256, %s19_s16, [#allocation7], %s1551_s20, %s1551_s20, %s1552_s21  }
   0x7   :  { %s1553_s22 = smov [#allocation10]   ;;  %s41_s26 = sshll.u32 %s2087_s2, 4  ;;  %s42_s26 = int_to_ptr.vmem [resolvable:$true] %s41_s26 }
   0x8   :  { %s32_s23 = sshll.u32 %s1553_s22, 4  ;;  %s1554_s0 = smov [#allocation12]   ;;  %s33_s23 = int_to_ptr.vmem [resolvable:$true] %s32_s23 }
   0x9   :  { %35 = dma.hbm_to_vmem [thread:$0]  %s31_s19, 256, %s33_s23, [#allocation11]  }
   0xa   :  { %44 = dma.vmem_to_smem %s42_s26, 16, %s1554_s0, [#allocation9]  }
   0xb   :  { %1542 = dma.done.wait [#allocation7], 256  }
   0xc   :  { %1543 = vsyncadd [#allocation7], 4294967040 }
   0xd   :  { %1544 = dma.done.wait [#allocation11], 256  }
   0xe   :  { %1545 = vsyncadd [#allocation11], 4294967040 }
   0xf   :  { %1546 = dma.done.wait [#allocation9], 16  }
  0x10   :  { %1547 = vsyncadd [#allocation9], 4294967280 }
  0x11   :  { %57 = sfence }
  0x12   :  { %v66_v0 = vld [vmem:[#allocation6] ss:$4 sm:$0x3]  ;;  %v1555_v1 = vmov 0.0   ;;  %v1556_v8 = vmov -inf   ;;  %vm145_vm0 = vcmask 1041408  }
  0x13   :  { %62 = vst [vmem:[#allocation2] sm:$0xf] %v1555_v1  ;;  %v68_v2 = vld [vmem:[#allocation6 + $0x8] ss:$4 sm:$0x3]  ;;  %vm146_vm1 = vcmask 1043458  }
  0x14   :  { %71 = vst [vmem:[#allocation1] ss:$2 sm:$0xff] %v66_v0  ;;  %v84_v4 = vld [vmem:[#allocation6 + $0x1] ss:$4 sm:$0x3]  ;;  %vm148_vm2 = vcmask 832516   ;;  %vm147_vm3 = vmor %vm146_vm1, %vm145_vm0 }
  0x15   :  { %73 = vst [vmem:[#allocation1 + $0x1] ss:$2 sm:$0xff] %v68_v2  ;;  %v86_v5 = vld [vmem:[#allocation6 + $0x9] ss:$4 sm:$0x3]  ;;  %vm149_vm4 = vmor %vm148_vm2, %vm147_vm3  ;;  %s1557_s1 = smov 51  }
  0x16   :  { %63 = vst [vmem:[#allocation3] sm:$0xf] %v1556_v8  ;;  %v102_v9 = vld [vmem:[#allocation6 + $0x2] ss:$4 sm:$0x3]  ;;  %vm159_vm5 = vcmask 1041816  }
  0x17   :  { %v104_v10 = vld [vmem:[#allocation6 + $0xa] ss:$4 sm:$0x3]  ;;  %v120_v15 = vld [vmem:[#allocation6 + $0x3] ss:$4 sm:$0x3]  ;;  %vm160_vm6 = vmor %vm146_vm1, %vm159_vm5 }
  0x18   :  { %v122_v16 = vld [vmem:[#allocation6 + $0xb] ss:$4 sm:$0x3]  ;;  %150 = vst.msk [vmem:[#allocation4] sm:$0x3f] %vm149_vm4, %v1555_v1  ;;  %vm161_vm7 = vcmask 414724  }
  0x19   :  { %151 = vst.msk [vmem:[#allocation5] sm:$0x3f] %vm149_vm4, %v1555_v1  ;;  %s1335_s2 = sld [smem:[#allocation12 + $0x15]]  ;;  %vm156_vm8 = vcmask 416768   ;;  %vm162_vm9 = vmor %vm161_vm7, %vm160_vm6  ;;  %s1558_s5 = smov 80   ;;  %vm190_vm10 = vcmask 916480  }
  0x1a   :  { %v64_v13 = vld [vmem:[#allocation2] sm:$0xf]  ;;  %s1333_s27 = sld [smem:[#allocation12 + $0xe]]  ;;  %s1559_s6 = smov 96   ;;  %vm212_vm11 = vcmask 785408   ;;  %vm233_vm12 = vcmask 654336  }
  0x1b   :  { %s1331_s28 = sld [smem:[#allocation12 + $0x7]]  ;;  %s1560_s7 = smov 112   ;;  %vm254_vm13 = vcmask 523264   ;;  %vm275_vm14 = vcmask 392192   ;;  %vm296_vm15 = vcmask 261120   ;;  %vm473_vm1 = vcmask 1039360  }
  0x1c   :  { %v74_v3 = vld [vmem:[#allocation1] sm:$0xff]  ;;  %s1341_s29 = sld [smem:[#allocation12 + $0x2a]]  ;;  %s1561_s11 = smov 32   ;;  %vm630_vm2 = vcmask 1031168   ;;  %vm787_vm3 = vcmask 1022976   ;;  %vm944_vm4 = vcmask 1014784  }
  0x1d   :  { %77 = vst [vmem:[#allocation1] ss:$2 sm:$0xff] %v66_v0  ;;  %v76_v14 = vadd.f32 %v74_v3, %v64_v13  ;;  %v65_v19 = vld [vmem:[#allocation3] sm:$0xf]  ;;  %s1337_s30 = sld [smem:[#allocation12 + $0x1c]]  ;;  %s1562_s12 = smov 64  }
  0x1e   :  { %79 = vst [vmem:[#allocation1 + $0x1] ss:$2 sm:$0xff] %v68_v2  ;;  %s1339_s4 = sld [smem:[#allocation12 + $0x23]]  ;;  %s1563_s13 = smov 48   ;;  %vm1101_vm5 = vcmask 1006592   ;;  %vm1258_vm6 = vcmask 998400  }
  0x1f   :  { %v227_v36 = vstv %s1335_s2  ;;  %s1349_s8 = sld [smem:[#allocation12 + $0x16]] }
  0x20   :  { %v206_v37 = vstv %s1333_s27  ;;  %s1345_s9 = sld [smem:[#allocation12 + $0x8]] }
  0x21   :  { %v184_v38 = vstv %s1331_s28  ;;  %s1347_s10 = sld [smem:[#allocation12 + $0xf]] }
  0x22   :  { %v290_v44 = vstv %s1341_s29  ;;  %s1355_s14 = sld [smem:[#allocation12 + $0x2b]] }
  0x23   :  { %v248_v45 = vstv %s1337_s30  ;;  %s1351_s15 = sld [smem:[#allocation12 + $0x1d]] }
  0x24   :  { %v269_v46 = vstv %s1339_s4  ;;  %s1353_s16 = sld [smem:[#allocation12 + $0x24]] }
  0x25   :  { %v80_v6 = vld [vmem:[#allocation1] sm:$0xff]  ;;  %v378_v51 = vstv %s1349_s8  ;;  %s1363_s17 = sld [smem:[#allocation12 + $0x17]] }
  0x26   :  { %89 = vst [vmem:[#allocation1] ss:$2 sm:$0xff] %v84_v4  ;;  %v82_v21 = vmax.f32 %v65_v19, %v80_v6  ;;  %v338_v52 = vstv %s1345_s9  ;;  %s1359_s18 = sld [smem:[#allocation12 + $0x9]] }
  0x27   :  { %91 = vst [vmem:[#allocation1 + $0x1] ss:$2 sm:$0xff] %v86_v5  ;;  %v358_v53 = vstv %s1347_s10  ;;  %s1361_s19 = sld [smem:[#allocation12 + $0x10]] }
  0x28   :  { %v438_v57 = vstv %s1355_s14  ;;  %s1369_s20 = sld [smem:[#allocation12 + $0x2c]] }
  0x29   :  { %v398_v58 = vstv %s1351_s15  ;;  %s1365_s21 = sld [smem:[#allocation12 + $0x1e]] }
  0x2a   :  { %v418_v59 = vstv %s1353_s16  ;;  %s1367_s22 = sld [smem:[#allocation12 + $0x25]] }
  0x2b   :  { %v535_v0 = vstv %s1363_s17  ;;  %s1377_s23 = sld [smem:[#allocation12 + $0x18]] }
  0x2c   :  { %v495_v1 = vstv %s1359_s18  ;;  %s1373_s24 = sld [smem:[#allocation12 + $0xa]] }
  0x2d   :  { %v515_v2 = vstv %s1361_s19  ;;  %s1375_s25 = sld [smem:[#allocation12 + $0x11]] }
  0x2e   :  { %v92_v7 = vld [vmem:[#allocation1] sm:$0xff]  ;;  %v595_v6 = vstv %s1369_s20  ;;  %s1391_s26 = sld [smem:[#allocation12 + $0x19]] }
  0x2f   :  { %95 = vst [vmem:[#allocation1] ss:$2 sm:$0xff] %v84_v4  ;;  %v94_v18 = vadd.f32 %v92_v7, %v76_v14  ;;  %v555_v7 = vstv %s1365_s21  ;;  %s1389_s0 = sld [smem:[#allocation12 + $0x12]] }
  0x30   :  { %97 = vst [vmem:[#allocation1 + $0x1] ss:$2 sm:$0xff] %v86_v5  ;;  %v575_v8 = vstv %s1367_s22  ;;  %s1393_s2 = sld [smem:[#allocation12 + $0x20]] }
  0x31   :  { %v692_v13 = vstv %s1377_s23  ;;  %s1381_s27 = sld [smem:[#allocation12 + $0x26]] }
  0x32   :  { %v652_v14 = vstv %s1373_s24  ;;  %s1379_s28 = sld [smem:[#allocation12 + $0x1f]] }
  0x33   :  { %s1405_s29 = sld [smem:[#allocation12 + $0x1a]] }
  0x34   :  { %s1383_s30 = sld [smem:[#allocation12 + $0x2d]] }
  0x35   :  { %s1401_s4 = sld [smem:[#allocation12 + $0xc]] }
  0x36   :  { %s1407_s8 = sld [smem:[#allocation12 + $0x21]] }
  0x37   :  { %v98_v11 = vld [vmem:[#allocation1] sm:$0xff]  ;;  %s1395_s9 = sld [smem:[#allocation12 + $0x27]] }
  0x38   :  { %107 = vst [vmem:[#allocation1] ss:$2 sm:$0xff] %v102_v9  ;;  %v100_v24 = vmax.f32 %v82_v21, %v98_v11  ;;  %v829_v21 = vstv %s1389_s0  ;;  %s1403_s10 = sld [smem:[#allocation12 + $0x13]] }
  0x39   :  { %109 = vst [vmem:[#allocation1 + $0x1] ss:$2 sm:$0xff] %v104_v10  ;;  %s1419_s14 = sld [smem:[#allocation12 + $0x1b]] }
  0x3a   :  { %s1397_s15 = sld [smem:[#allocation12 + $0x2e]] }
  0x3b   :  { %s1415_s16 = sld [smem:[#allocation12 + $0xd]] }
  0x3c   :  { %s1338_s17 = sld [smem:[#allocation12 + $0x4d]] }
  0x3d   :  { %s1409_s18 = sld [smem:[#allocation12 + $0x28]] }
  0x3e   :  { %s1417_s19 = sld [smem:[#allocation12 + $0x14]] }
  0x3f   :  { %s1346_s20 = sld [smem:[#allocation12 + $0x39]] }
  0x40   :  { %v110_v12 = vld [vmem:[#allocation1] sm:$0xff]  ;;  %s1334_s21 = sld [smem:[#allocation12 + $0x3f]] }
  0x41   :  { %113 = vst [vmem:[#allocation1] ss:$2 sm:$0xff] %v102_v9  ;;  %v112_v20 = vadd.f32 %v110_v12, %v94_v18  ;;  %s1332_s22 = sld [smem:[#allocation12 + $0x38]] }
  0x42   :  { %115 = vst [vmem:[#allocation1 + $0x1] ss:$2 sm:$0xff] %v104_v10  ;;  %s1344_s23 = sld [smem:[#allocation12 + $0x32]] }
  0x43   :  { %s1343_s24 = sld [smem:[#allocation12 + $0x1]] }
  0x44   :  { %s1336_s0 = sld [smem:[#allocation12 + $0x46]] }
  0x49   :  { %v116_v17 = vld [vmem:[#allocation1] sm:$0xff] }
  0x4a   :  { %125 = vst [vmem:[#allocation1] ss:$2 sm:$0xff] %v120_v15  ;;  %v118_v25 = vmax.f32 %v100_v24, %v116_v17 }
  0x4b   :  { %127 = vst [vmem:[#allocation1 + $0x1] ss:$2 sm:$0xff] %v122_v16 }
  0x52   :  { %v128_v22 = vld [vmem:[#allocation1] sm:$0xff] }
  0x53   :  { %v130_v23 = vadd.f32 %v128_v22, %v112_v20  ;;  %131 = vst [vmem:[#allocation1] ss:$2 sm:$0xff] %v120_v15  ;;  %v672_v15 = vstv %s1375_s25  ;;  %v849_v20 = vstv %s1391_s26  ;;  %s1352_s25 = sld [smem:[#allocation12 + $0x4e]] }
  0x54   :  { %133 = vst [vmem:[#allocation1 + $0x1] ss:$2 sm:$0xff] %v122_v16  ;;  %s1340_s26 = sld [smem:[#allocation12 + $0x54]] }
  0x55   :  { %137 = vst [vmem:[#allocation2] sm:$0xf] %v130_v23 }
  0x5b   :  { %v134_v26 = vld [vmem:[#allocation1] sm:$0xff] }
  0x5c   :  { %v142_v27 = vld [vmem:[#allocation2] sm:$0xf]  ;;  %v136_v28 = vmax.f32 %v118_v25, %v134_v26  ;;  %v869_v26 = vstv %s1393_s2  ;;  %s1348_s2 = sld [smem:[#allocation12 + $0x40]] }
  0x5d   :  { %v143_v29 = vmul.f32 0.25, %v142_v27  ;;  %v732_v27 = vstv %s1381_s27  ;;  %s1342_s27 = sld [smem:[#allocation12 + $0x5b]] }
  0x5e   :  { %138 = vst [vmem:[#allocation3] sm:$0xf] %v136_v28  ;;  %v712_v28 = vstv %s1379_s28  ;;  %s1358_s28 = sld [smem:[#allocation12 + $0x33]] }
  0x5f   :  { %153 = vrot.lane.b32.xlu0 %v143_v29, %s1557_s1 }
  0x65   :  { %v144_v30 = vld [vmem:[#allocation3] sm:$0xf] }
  0x67   :  { %165 = vrot.lane.b32.xlu0 %v144_v30, %s1557_s1  ;;  %s1387_s1 = sld [smem:[#allocation12 + $0xb]] }
  0x6d   :  { %v809_v22 = vstv %s1387_s1  ;;  %s1360_s1 = sld [smem:[#allocation12 + $0x3a]] }
  0xd1   :  { %v154_v31 = vpop.permute.xlu0 %153 }
  0xd2   :  { %v155_v32 = vrot.slane %v154_v31, 6 }
  0xd4   :  { %v157_v33 = vsel %vm156_vm8, %v155_v32, %v154_v31 }
  0xd5   :  { %163 = vst.msk [vmem:[#allocation4] sm:$0x3f] %vm162_vm9, %v157_v33  ;;  %v1006_v33 = vstv %s1405_s29  ;;  %s1357_s29 = sld [smem:[#allocation12 + $0x2]] }
  0xd9   :  { %v166_v34 = vpop.permute.xlu0 %165 }
  0xda   :  { %v167_v35 = vrot.slane %v166_v34, 6 }
  0xdc   :  { %v168_v39 = vsel %vm156_vm8, %v167_v35, %v166_v34  ;;  %v183_v40 = vld [vmem:[#allocation4] sm:$0x3f]  ;;  %v752_v34 = vstv %s1383_s30  ;;  %v966_v35 = vstv %s1401_s4  ;;  %s1718_s30 = sld [smem:[#allocation12 + $0x4f]] }
  0xdd   :  { %170 = vst.msk [vmem:[#allocation5] sm:$0x3f] %vm162_vm9, %v168_v39  ;;  %v228_v41 = vmul.f32 %v227_v36, %v183_v40  ;;  %v207_v42 = vmul.f32 %v206_v37, %v183_v40  ;;  %v185_v43 = vmul.f32 %v184_v38, %v183_v40  ;;  %v291_v47 = vmul.f32 %v290_v44, %v183_v40  ;;  %v1611_v50 = vld [vmem:[#allocation4] sm:$0x3f]  ;;  %s1354_s4 = sld [smem:[#allocation12 + $0x55]] }
  0xde   :  { %v249_v48 = vmul.f32 %v248_v45, %v183_v40  ;;  %v270_v49 = vmul.f32 %v269_v46, %v183_v40  ;;  %v379_v54 = vmul.f32 %v378_v51, %v1611_v50  ;;  %v339_v55 = vmul.f32 %v338_v52, %v1611_v50  ;;  %v1625_v63 = vld [vmem:[#allocation4] sm:$0x3f] }
  0xdf   :  { %230 = vrot.lane.b32.xlu0 %v228_v41, %s1558_s5  ;;  %209 = vrot.lane.b32.xlu2 %v207_v42, %s1559_s6  ;;  %v359_v56 = vmul.f32 %v358_v53, %v1611_v50  ;;  %v439_v60 = vmul.f32 %v438_v57, %v1611_v50  ;;  %v399_v61 = vmul.f32 %v398_v58, %v1611_v50  ;;  %v1639_v12 = vld [vmem:[#allocation4] sm:$0x3f]  ;;  %v1026_v39 = vstv %s1407_s8  ;;  %s1350_s8 = sld [smem:[#allocation12 + $0x47]] }
  0xe0   :  { %187 = vrot.lane.b32.xlu1 %v185_v43, %s1560_s7  ;;  %v419_v62 = vmul.f32 %v418_v59, %v1611_v50  ;;  %v536_v3 = vmul.f32 %v535_v0, %v1625_v63  ;;  %v496_v4 = vmul.f32 %v495_v1, %v1625_v63  ;;  %v516_v5 = vmul.f32 %v515_v2, %v1625_v63  ;;  %v1647_v19 = vld [vmem:[#allocation4] sm:$0x3f] }
  0xe1   :  { %v596_v9 = vmul.f32 %v595_v6, %v1625_v63  ;;  %v556_v10 = vmul.f32 %v555_v7, %v1625_v63  ;;  %v576_v11 = vmul.f32 %v575_v8, %v1625_v63  ;;  %v693_v16 = vmul.f32 %v692_v13, %v1639_v12  ;;  %v1661_v32 = vld [vmem:[#allocation4] sm:$0x3f] }
  0xe2   :  { %v653_v17 = vmul.f32 %v652_v14, %v1639_v12  ;;  %v673_v18 = vmul.f32 %v672_v15, %v1639_v12  ;;  %v850_v23 = vmul.f32 %v849_v20, %v1647_v19  ;;  %v830_v24 = vmul.f32 %v829_v21, %v1647_v19  ;;  %v1675_v45 = vld [vmem:[#allocation4] sm:$0x3f] }
  0xe3   :  { %v810_v25 = vmul.f32 %v809_v22, %v1647_v19  ;;  %v870_v29 = vmul.f32 %v869_v26, %v1647_v19  ;;  %v733_v30 = vmul.f32 %v732_v27, %v1639_v12  ;;  %v713_v31 = vmul.f32 %v712_v28, %v1639_v12 }
  0xe4   :  { %v1007_v36 = vmul.f32 %v1006_v33, %v1661_v32  ;;  %v753_v37 = vmul.f32 %v752_v34, %v1639_v12  ;;  %v967_v38 = vmul.f32 %v966_v35, %v1661_v32  ;;  %v889_v40 = vstv %s1395_s9  ;;  %v1683_v53 = vld [vmem:[#allocation5] sm:$0x3f]  ;;  %s1734_s9 = sld [smem:[#allocation12 + $0x3b]] }
  0xe5   :  { %v986_v41 = vstv %s1403_s10  ;;  %v1027_v42 = vmul.f32 %v1026_v39, %v1661_v32  ;;  %v890_v43 = vmul.f32 %v889_v40, %v1647_v19  ;;  %v1163_v46 = vstv %s1419_s14  ;;  %v1695_v2 = vld [vmem:[#allocation5] sm:$0x3f]  ;;  %s1362_s10 = sld [smem:[#allocation12 + $0x41]] }
  0xe6   :  { %v987_v44 = vmul.f32 %v986_v41, %v1661_v32  ;;  %v1143_v57 = vstv %s1417_s19  ;;  %v217_v0 = vstv %s1334_s21  ;;  %v196_v1 = vstv %s1332_s22  ;;  %v1722_v28 = vld [vmem:[#allocation5] sm:$0x3f]  ;;  %s1356_s14 = sld [smem:[#allocation12 + $0x5c]] }
  0xe7   :  { %293 = vrot.lane.b32.xlu0 %v291_v47, %s1561_s11  ;;  %251 = vrot.lane.b32.xlu2 %v249_v48, %s1562_s12  ;;  %v909_v47 = vstv %s1397_s15  ;;  %v1123_v48 = vstv %s1415_s16  ;;  %v197_v6 = vmul.f32 %v196_v1, %v1683_v53  ;;  %s1372_s15 = sld [smem:[#allocation12 + $0x34]] }
  0xe8   :  { %272 = vrot.lane.b32.xlu1 %v270_v49, %s1563_s13  ;;  %v1164_v49 = vmul.f32 %v1163_v46, %v1675_v45  ;;  %v910_v51 = vmul.f32 %v909_v47, %v1647_v19  ;;  %v1124_v52 = vmul.f32 %v1123_v48, %v1675_v45  ;;  %v329_v7 = vstv %s1343_s24  ;;  %s1371_s16 = sld [smem:[#allocation12 + $0x3]] }
  0xe9   :  { %v408_v13 = vstv %s1352_s25  ;;  %v280_v14 = vstv %s1340_s26  ;;  %v368_v26 = vstv %s1348_s2  ;;  %v301_v27 = vstv %s1342_s27  ;;  %s1364_s19 = sld [smem:[#allocation12 + $0x48]] }
  0xea   :  { %v409_v20 = vmul.f32 %v408_v13, %v1695_v2  ;;  %v281_v21 = vmul.f32 %v280_v14, %v1683_v53  ;;  %v302_v33 = vmul.f32 %v301_v27, %v1683_v53  ;;  %v486_v34 = vstv %s1357_s29  ;;  %s1376_s21 = sld [smem:[#allocation12 + $0x42]]  ;;  %v1773_v14 = vld [vmem:[#allocation5] sm:$0x3f] }
  0xeb   :  { %v565_v41 = vstv %s1718_s30  ;;  %s1370_s22 = sld [smem:[#allocation12 + $0x5d]] }
  0xec   :  { %s1378_s24 = sld [smem:[#allocation12 + $0x49]] }
  0xed   :  { %s1390_s25 = sld [smem:[#allocation12 + $0x43]] }
  0xee   :  { %v643_v1 = vstv %s1371_s16  ;;  %s1394_s26 = sld [smem:[#allocation12 + $0x51]] }
  0xef   :  { %381 = vrot.lane.b32.xlu0 %v379_v54, %s1558_s5  ;;  %341 = vrot.lane.b32.xlu2 %v339_v55, %s1560_s7  ;;  %v259_v54 = vstv %s1338_s17  ;;  %s1752_s17 = sld [smem:[#allocation12 + $0x3c]] }
  0xf0   :  { %361 = vrot.lane.b32.xlu1 %v359_v56, %s1559_s6  ;;  %v1046_v56 = vstv %s1409_s18  ;;  %v260_v58 = vmul.f32 %v259_v54, %v1683_v53  ;;  %v662_v54 = vstv %s1734_s9  ;;  %s1368_s18 = sld [smem:[#allocation12 + $0x56]] }
  0xf1   :  { %v1047_v59 = vmul.f32 %v1046_v56, %v1661_v32  ;;  %v525_v56 = vstv %s1362_s10  ;;  %v605_v27 = vstv %s1370_s22  ;;  %s1386_s2 = sld [smem:[#allocation12 + $0x35]] }
  0xf2   :  { %s1385_s27 = sld [smem:[#allocation12 + $0x4]] }
  0xf3   :  { %s1384_s29 = sld [smem:[#allocation12 + $0x5e]] }
  0xf4   :  { %s1404_s30 = sld [smem:[#allocation12 + $0x44]] }
  0xf5   :  { %s1416_s9 = sld [smem:[#allocation12 + $0x3e]] }
  0xf6   :  { %s1400_s10 = sld [smem:[#allocation12 + $0x36]] }
  0xf7   :  { %441 = vrot.lane.b32.xlu0 %v439_v60, %s1561_s11  ;;  %401 = vrot.lane.b32.xlu2 %v399_v61, %s1562_s12  ;;  %v1144_v60 = vmul.f32 %v1143_v57, %v1675_v45  ;;  %v448_v57 = vstv %s1356_s14  ;;  %s1399_s14 = sld [smem:[#allocation12 + $0x5]] }
  0xf8   :  { %421 = vrot.lane.b32.xlu1 %v419_v62, %s1563_s13  ;;  %v348_v62 = vstv %s1346_s20  ;;  %s1380_s20 = sld [smem:[#allocation12 + $0x50]] }
  0xf9   :  { %s1398_s16 = sld [smem:[#allocation12 + $0x5f]] }
  0xfa   :  { %s1425_s22 = sld [smem:[#allocation12 + $0x30]] }
  0xff   :  { %538 = vrot.lane.b32.xlu0 %v536_v3, %s1558_s5  ;;  %498 = vrot.lane.b32.xlu2 %v496_v4, %s1560_s7  ;;  %v334_v3 = vstv %s1344_s23  ;;  %v349_v4 = vmul.f32 %v348_v62, %v1695_v2  ;;  %v526_v62 = vmul.f32 %v525_v56, %v1722_v28  ;;  %s1392_s23 = sld [smem:[#allocation12 + $0x4a]] }
 0x100   :  { %518 = vrot.lane.b32.xlu1 %v516_v5, %s1559_s6  ;;  %v218_v5 = vmul.f32 %v217_v0, %v1683_v53  ;;  %v335_v8 = vmul.f32 %v334_v3, %v1695_v2  ;;  %v449_v0 = vmul.f32 %v448_v57, %v1695_v2  ;;  %v1815_v57 = vld [vmem:[#allocation5] sm:$0x3f] }
 0x107   :  { %598 = vrot.lane.b32.xlu0 %v596_v9, %s1561_s11  ;;  %558 = vrot.lane.b32.xlu2 %v556_v10, %s1562_s12  ;;  %v330_v9 = vmul.f32 %v329_v7, %v1611_v50 }
 0x108   :  { %578 = vrot.lane.b32.xlu1 %v576_v11, %s1563_s13 }
 0x109   :  { %v336_v15 = vadd.f32 %v335_v8, %v330_v9  ;;  %v819_v9 = vstv %s1752_s17  ;;  %s1418_s17 = sld [smem:[#allocation12 + $0x45]] }
 0x10f   :  { %695 = vrot.lane.b32.xlu0 %v693_v16, %s1558_s5  ;;  %655 = vrot.lane.b32.xlu2 %v653_v17, %s1560_s7  ;;  %v238_v16 = vstv %s1336_s0  ;;  %s1382_s0 = sld [smem:[#allocation12 + $0x57]] }
 0x110   :  { %675 = vrot.lane.b32.xlu1 %v673_v18, %s1559_s6  ;;  %v239_v50 = vmul.f32 %v238_v16, %v1683_v53 }
 0x117   :  { %852 = vrot.lane.b32.xlu0 %v850_v23, %s1558_s5  ;;  %832 = vrot.lane.b32.xlu2 %v830_v24, %s1559_s6 }
 0x118   :  { %812 = vrot.lane.b32.xlu1 %v810_v25, %s1560_s7  ;;  %v505_v25 = vstv %s1360_s1  ;;  %s1402_s1 = sld [smem:[#allocation12 + $0x3d]] }
 0x11f   :  { %872 = vrot.lane.b32.xlu0 %v870_v29, %s1562_s12  ;;  %735 = vrot.lane.b32.xlu2 %v733_v30, %s1563_s13  ;;  %v491_v29 = vstv %s1358_s28  ;;  %v506_v30 = vmul.f32 %v505_v25, %v1722_v28  ;;  %v722_v25 = vstv %s1380_s20  ;;  %s1406_s28 = sld [smem:[#allocation12 + $0x4b]] }
 0x120   :  { %715 = vrot.lane.b32.xlu1 %v713_v31, %s1562_s12  ;;  %v369_v31 = vmul.f32 %v368_v26, %v1695_v2  ;;  %v492_v35 = vmul.f32 %v491_v29, %v1722_v28  ;;  %v682_v26 = vstv %s1376_s21  ;;  %s1410_s20 = sld [smem:[#allocation12 + $0x59]] }
 0x121   :  { %s1413_s21 = sld [smem:[#allocation12 + $0x6]] }
 0x127   :  { %1009 = vrot.lane.b32.xlu0 %v1007_v36, %s1558_s5  ;;  %755 = vrot.lane.b32.xlu2 %v753_v37, %s1561_s11  ;;  %v487_v36 = vmul.f32 %v486_v34, %v1625_v63  ;;  %v566_v63 = vmul.f32 %v565_v41, %v1722_v28 }
 0x128   :  { %969 = vrot.lane.b32.xlu1 %v967_v38, %s1560_s7 }
 0x12f   :  { %1029 = vrot.lane.b32.xlu0 %v1027_v42, %s1562_s12  ;;  %892 = vrot.lane.b32.xlu2 %v890_v43, %s1563_s13  ;;  %v428_v42 = vstv %s1354_s4  ;;  %v493_v43 = vadd.f32 %v492_v35, %v487_v36  ;;  %v859_v36 = vstv %s1392_s23  ;;  %s1408_s4 = sld [smem:[#allocation12 + $0x52]] }
 0x130   :  { %989 = vrot.lane.b32.xlu1 %v987_v44, %s1559_s6  ;;  %v388_v44 = vstv %s1350_s8  ;;  %v429_v48 = vmul.f32 %v428_v42, %v1695_v2  ;;  %s1396_s8 = sld [smem:[#allocation12 + $0x58]] }
 0x131   :  { %s1412_s23 = sld [smem:[#allocation12 + $0x60]] }
 0x137   :  { %1166 = vrot.lane.b32.xlu0 %v1164_v49, %s1558_s5  ;;  %912 = vrot.lane.b32.xlu2 %v910_v51, %s1561_s11  ;;  %v389_v49 = vmul.f32 %v388_v44, %v1695_v2  ;;  %v585_v2 = vstv %s1368_s18  ;;  %s1422_s18 = sld [smem:[#allocation12 + $0x53]] }
 0x138   :  { %1126 = vrot.lane.b32.xlu1 %v1124_v52, %s1560_s7  ;;  %v586_v16 = vmul.f32 %v585_v2, %v1722_v28 }
 0x139   :  { %v1685_v55 = vpop.permute.xlu2 %209 }
 0x13f   :  { %1049 = vrot.lane.b32.xlu2 %v1047_v59, %s1563_s13  ;;  %262 = vrot.lane.b32.xlu0 %v260_v58, %s1562_s12  ;;  %v1757_v58 = vld [vmem:[#allocation5] sm:$0x3f]  ;;  %v648_v59 = vstv %s1372_s15  ;;  %s1411_s15 = sld [smem:[#allocation12 + $0x2f]] }
 0x140   :  { %1146 = vrot.lane.b32.xlu1 %v1144_v60, %s1559_s6  ;;  %v663_v60 = vmul.f32 %v662_v54, %v1757_v58  ;;  %v649_v3 = vmul.f32 %v648_v59, %v1757_v58  ;;  %v723_v29 = vmul.f32 %v722_v25, %v1757_v58  ;;  %v805_v59 = vstv %s1386_s2  ;;  %s1568_s2 = smov 123  }
 0x141   :  { %v1693_v61 = vpop.permute.xlu2 %251 }
 0x147   :  { %351 = vrot.lane.b32.xlu0 %v349_v4, %s1560_s7  ;;  %220 = vrot.lane.b32.xlu2 %v218_v5, %s1559_s6  ;;  %v644_v4 = vmul.f32 %v643_v1, %v1639_v12  ;;  %v820_v12 = vmul.f32 %v819_v9, %v1773_v14  ;;  %v762_v9 = vstv %s1384_s29 }
 0x148   :  { %199 = vrot.lane.b32.xlu1 %v197_v6, %s1560_s7 }
 0x149   :  { %v342_v10 = vpop.permute.xlu2 %341 }
 0x14a   :  { %v343_v11 = vrot.slane %v342_v10, 2 }
 0x14c   :  { %v344_v17 = vsel %vm190_vm10, %v342_v10, %v343_v11  ;;  %v650_v10 = vadd.f32 %v649_v3, %v644_v4  ;;  %v545_v11 = vstv %s1364_s19  ;;  %s1420_s19 = sld [smem:[#allocation12 + $0x4c]] }
 0x14d   :  { %v1706_v18 = vadd.f32 %v344_v17, %v336_v15  ;;  %v546_v17 = vmul.f32 %v545_v11, %v1722_v28 }
 0x14f   :  { %411 = vrot.lane.b32.xlu0 %v409_v20, %s1562_s12  ;;  %283 = vrot.lane.b32.xlu2 %v281_v21, %s1563_s13 }
 0x150   :  { %241 = vrot.lane.b32.xlu1 %v239_v50, %s1558_s5 }
 0x151   :  { %v1714_v22 = vpop.permute.xlu2 %401  ;;  %v1716_v23 = vpop.permute.xlu0 %230 }
 0x152   :  { %v1720_v24 = vpop.permute.xlu1 %187 }
 0x157   :  { %508 = vrot.lane.b32.xlu0 %v506_v30, %s1560_s7  ;;  %371 = vrot.lane.b32.xlu2 %v369_v31, %s1559_s6  ;;  %v683_v30 = vmul.f32 %v682_v26, %v1757_v58  ;;  %v606_v31 = vmul.f32 %v605_v27, %v1722_v28  ;;  %v860_v28 = vmul.f32 %v859_v36, %v1773_v14 }
 0x158   :  { %304 = vrot.lane.b32.xlu1 %v302_v33, %s1561_s11 }
 0x159   :  { %v499_v37 = vpop.permute.xlu2 %498  ;;  %v1732_v38 = vpop.permute.xlu0 %293 }
 0x15a   :  { %v500_v39 = vrot.slane %v499_v37, 2  ;;  %v1736_v40 = vpop.permute.xlu1 %272 }
 0x15c   :  { %v501_v46 = vsel %vm190_vm10, %v499_v37, %v500_v39  ;;  %v702_v37 = vstv %s1378_s24  ;;  %v839_v39 = vstv %s1390_s25  ;;  %s1421_s24 = sld [smem:[#allocation12 + $0x22]] }
 0x15d   :  { %v1740_v47 = vadd.f32 %v501_v46, %v493_v43  ;;  %v703_v41 = vmul.f32 %v702_v37, %v1757_v58  ;;  %v840_v42 = vmul.f32 %v839_v39, %v1773_v14  ;;  %v1844_v37 = vld [vmem:[#allocation5] sm:$0x3f]  ;;  %v962_v39 = vstv %s1400_s10  ;;  %s1424_s25 = sld [smem:[#allocation12 + $0x5a]] }
 0x15f   :  { %568 = vrot.lane.b32.xlu0 %v566_v63, %s1562_s12  ;;  %431 = vrot.lane.b32.xlu2 %v429_v48, %s1563_s13  ;;  %v879_v63 = vstv %s1394_s26  ;;  %v742_v48 = vstv %s1382_s0  ;;  %s172_s26 = sld [smem:[#allocation12]] }
 0x160   :  { %391 = vrot.lane.b32.xlu1 %v389_v49, %s1558_s5  ;;  %v976_v49 = vstv %s1402_s1  ;;  %v880_v54 = vmul.f32 %v879_v63, %v1773_v14  ;;  %v743_v56 = vmul.f32 %v742_v48, %v1757_v58  ;;  %s1426_s0 = sld [smem:[#allocation12 + $0x61]]  ;;  %s1567_s1 = smov 124  }
 0x161   :  { %v1748_v51 = vpop.permute.xlu2 %558  ;;  %v1750_v52 = vpop.permute.xlu0 %381 }
 0x162   :  { %v1754_v53 = vpop.permute.xlu1 %361 }
 0x167   :  { %665 = vrot.lane.b32.xlu0 %v663_v60, %s1560_s7  ;;  %528 = vrot.lane.b32.xlu2 %v526_v62, %s1559_s6  ;;  %v977_v60 = vmul.f32 %v976_v49, %v1815_v57  ;;  %v800_v62 = vstv %s1385_s27  ;;  %s1569_s27 = smov 122  }
 0x168   :  { %451 = vrot.lane.b32.xlu1 %v449_v0, %s1561_s11  ;;  %v806_v0 = vmul.f32 %v805_v59, %v1773_v14  ;;  %v801_v4 = vmul.f32 %v800_v62, %v1647_v19  ;;  %v919_v59 = vstv %s1398_s16  ;;  %v1153_v62 = vstv %s1418_s17 }
 0x169   :  { %v656_v5 = vpop.permute.xlu2 %655  ;;  %v1767_v6 = vpop.permute.xlu0 %441 }
 0x16a   :  { %v657_v7 = vrot.slane %v656_v5, 2  ;;  %v1769_v8 = vpop.permute.xlu1 %421  ;;  %v807_v11 = vadd.f32 %v806_v0, %v801_v4 }
 0x16c   :  { %v658_v13 = vsel %vm190_vm10, %v656_v5, %v657_v7  ;;  %v1016_v7 = vstv %s1406_s28  ;;  %s1570_s28 = smov [#allocation13]  }
 0x16d   :  { %v1775_v15 = vadd.f32 %v658_v13, %v650_v10  ;;  %v996_v10 = vstv %s1404_s30  ;;  %s1316_s29 = sshll.u32 %s1570_s28, 4  ;;  %s1317_s29 = int_to_ptr.vmem [resolvable:$true] %s1316_s29 }
 0x16e   :  { %v997_v25 = vmul.f32 %v996_v10, %v1815_v57 }
 0x16f   :  { %822 = vrot.lane.b32.xlu0 %v820_v12, %s1560_s7  ;;  %588 = vrot.lane.b32.xlu2 %v586_v16, %s1563_s13  ;;  %v1017_v12 = vmul.f32 %v1016_v7, %v1815_v57  ;;  %v763_v16 = vmul.f32 %v762_v9, %v1757_v58  ;;  %v1036_v58 = vstv %s1408_s4  ;;  %v920_v7 = vmul.f32 %v919_v59, %v1773_v14 }
 0x170   :  { %548 = vrot.lane.b32.xlu1 %v546_v17, %s1558_s5 }
 0x171   :  { %v1783_v20 = vpop.permute.xlu2 %832  ;;  %v1785_v21 = vpop.permute.xlu0 %538 }
 0x172   :  { %v1787_v50 = vpop.permute.xlu1 %518 }
 0x177   :  { %725 = vrot.lane.b32.xlu0 %v723_v29, %s1562_s12  ;;  %685 = vrot.lane.b32.xlu2 %v683_v30, %s1559_s6  ;;  %v899_v29 = vstv %s1396_s8  ;;  %v1133_v30 = vstv %s1416_s9  ;;  %s1318_s8 = sshll.u32 %s2088_s3, 4  ;;  %s1319_s8 = int_to_ptr.hbm [resolvable:$true] %s1318_s8 }
 0x178   :  { %608 = vrot.lane.b32.xlu1 %v606_v31, %s1561_s11  ;;  %v1037_v31 = vmul.f32 %v1036_v58, %v1815_v57  ;;  %v900_v36 = vmul.f32 %v899_v29, %v1773_v14  ;;  %v1193_v14 = vstv %s1422_s18 }
 0x179   :  { %v1795_v33 = vpop.permute.xlu2 %735  ;;  %v1797_v34 = vpop.permute.xlu0 %598 }
 0x17a   :  { %v1799_v35 = vpop.permute.xlu1 %578 }
 0x17f   :  { %862 = vrot.lane.b32.xlu0 %v860_v28, %s1558_s5  ;;  %705 = vrot.lane.b32.xlu2 %v703_v41, %s1558_s5  ;;  %v1134_v28 = vmul.f32 %v1133_v30, %v1844_v37  ;;  %v957_v41 = vstv %s1399_s14  ;;  %v1114_v30 = vstv %s1413_s21 }
 0x180   :  { %842 = vrot.lane.b32.xlu1 %v840_v42, %s1559_s6  ;;  %v963_v42 = vmul.f32 %v962_v39, %v1815_v57  ;;  %v958_v49 = vmul.f32 %v957_v41, %v1661_v32 }
 0x181   :  { %v1807_v43 = vpop.permute.xlu2 %755  ;;  %v1809_v44 = vpop.permute.xlu0 %695 }
 0x182   :  { %v1811_v46 = vpop.permute.xlu1 %675  ;;  %v964_v0 = vadd.f32 %v963_v42, %v958_v49  ;;  %v1223_v42 = vstv %s1425_s22  ;;  %v1076_v49 = vstv %s1412_s23 }
 0x187   :  { %882 = vrot.lane.b32.xlu0 %v880_v54, %s1562_s12  ;;  %745 = vrot.lane.b32.xlu2 %v743_v56, %s1563_s13  ;;  %v1066_v56 = vstv %s1411_s15 }
 0x188   :  { %979 = vrot.lane.b32.xlu1 %v977_v60, %s1560_s7 }
 0x189   :  { %v1822_v1 = vpop.permute.xlu2 %892  ;;  %v1824_v3 = vpop.permute.xlu0 %852 }
 0x18a   :  { %v813_v5 = vpop.permute.xlu1 %812 }
 0x18b   :  { %v814_v2 = vrot.slane %v813_v5, 2 }
 0x18d   :  { %v815_v13 = vsel %vm190_vm10, %v813_v5, %v814_v2  ;;  %v1067_v5 = vmul.f32 %v1066_v56, %v1661_v32  ;;  %v1154_v2 = vmul.f32 %v1153_v62, %v1844_v37  ;;  %v1183_v56 = vstv %s1421_s24 }
 0x18e   :  { %v1830_v17 = vadd.f32 %v815_v13, %v807_v11  ;;  %v1173_v13 = vstv %s1420_s19  ;;  %v1224_v62 = vmul.f32 %v1223_v42, %v1675_v45 }
 0x18f   :  { %1019 = vrot.lane.b32.xlu0 %v1017_v12, %s1558_s5  ;;  %765 = vrot.lane.b32.xlu2 %v763_v16, %s1561_s11  ;;  %v1056_v12 = vstv %s1410_s20  ;;  %v1194_v16 = vmul.f32 %v1193_v14, %v1844_v37 }
 0x190   :  { %999 = vrot.lane.b32.xlu1 %v997_v25, %s1559_s6  ;;  %v1174_v25 = vmul.f32 %v1173_v13, %v1844_v37  ;;  %v1057_v29 = vmul.f32 %v1056_v12, %v1815_v57  ;;  %v1213_v13 = vstv %s1424_s25 }
 0x191   :  { %v1836_v19 = vpop.permute.xlu2 %912  ;;  %v1838_v26 = vpop.permute.xlu0 %872 }
 0x192   :  { %v1840_v27 = vpop.permute.xlu1 %715 }
 0x197   :  { %1039 = vrot.lane.b32.xlu0 %v1037_v31, %s1562_s12  ;;  %902 = vrot.lane.b32.xlu2 %v900_v36, %s1563_s13 }
 0x198   :  { %1136 = vrot.lane.b32.xlu1 %v1134_v28, %s1560_s7  ;;  %s1414_s7 = sld [smem:[#allocation12 + $0x37]]  ;;  %v1115_v28 = vmul.f32 %v1114_v30, %v1675_v45  ;;  %v1214_v30 = vmul.f32 %v1213_v13, %v1844_v37 }
 0x199   :  { %v1851_v63 = vpop.permute.xlu2 %1049  ;;  %v1853_v48 = vpop.permute.xlu0 %1009 }
 0x19a   :  { %v970_v54 = vpop.permute.xlu1 %969 }
 0x19b   :  { %v971_v60 = vrot.slane %v970_v54, 2 }
 0x19d   :  { %v972_v4 = vsel %vm190_vm10, %v970_v54, %v971_v60 }
 0x19e   :  { %v1859_v9 = vadd.f32 %v972_v4, %v964_v0  ;;  %v1119_v58 = vstv %s1414_s7  ;;  %v1077_v0 = vmul.f32 %v1076_v49, %v1815_v57  ;;  %v174_v57 = vstv %s172_s26 }
 0x19f   :  { %1069 = vrot.lane.b32.xlu0 %v1067_v5, %s1561_s11  ;;  %922 = vrot.lane.b32.xlu2 %v920_v7, %s1561_s11  ;;  %v1120_v31 = vmul.f32 %v1119_v58, %v1844_v37  ;;  %v1184_v5 = vmul.f32 %v1183_v56, %v1675_v45  ;;  %v173_v58 = vld [vmem:[#allocation4] sm:$0xf] }
 0x1a0   :  { %1156 = vrot.lane.b32.xlu1 %v1154_v2, %s1559_s6  ;;  %s1878_s6 = sld [smem:[#allocation12 + $0x31]] }
 0x1a1   :  { %v1865_v10 = vpop.permute.xlu2 %220  ;;  %v1867_v11 = vpop.permute.xlu0 %1029  ;;  %v1121_v59 = vadd.f32 %v1120_v31, %v1115_v28 }
 0x1a2   :  { %v1869_v32 = vpop.permute.xlu1 %989 }
 0x1a6   :  { %v179_v12 = vstv %s1878_s6 }
 0x1a7   :  { %1196 = vrot.lane.b32.xlu0 %v1194_v16, %s1562_s12  ;;  %1176 = vrot.lane.b32.xlu2 %v1174_v25, %s1558_s5  ;;  %s1423_s5 = sld [smem:[#allocation12 + $0x29]]  ;;  %v178_v16 = vld [vmem:[#allocation5] sm:$0xf] }
 0x1a8   :  { %1059 = vrot.lane.b32.xlu1 %v1057_v29, %s1563_s13  ;;  %v189_v29 = vrot.slane %v1720_v24, 2  ;;  %v180_v31 = vmul.f32 %v179_v12, %v178_v16 }
 0x1a9   :  { %v1880_v36 = vpop.permute.xlu2 %283  ;;  %v1882_v39 = vpop.permute.xlu0 %1166 }
 0x1aa   :  { %v1127_v41 = vpop.permute.xlu1 %1126  ;;  %v191_v42 = vsel %vm190_vm10, %v1720_v24, %v189_v29  ;;  %v383_v29 = vrot.slane %v1750_v52, 2 }
 0x1ab   :  { %v1128_v54 = vrot.slane %v1127_v41, 2 }
 0x1ad   :  { %v1129_v60 = vsel %vm190_vm10, %v1127_v41, %v1128_v54  ;;  %v1203_v25 = vstv %s1423_s5  ;;  %v175_v41 = vmul.f32 %v174_v57, %v173_v58 }
 0x1ae   :  { %v1888_v4 = vadd.f32 %v1129_v60, %v1121_v59  ;;  %v1204_v28 = vmul.f32 %v1203_v25, %v1675_v45  ;;  %v363_v59 = vrot.slane %v1754_v53, 2  ;;  %v1233_v45 = vstv %s1426_s0 }
 0x1af   :  { %1226 = vrot.lane.b32.xlu0 %v1224_v62, %s1561_s11  ;;  %1079 = vrot.lane.b32.xlu2 %v1077_v0, %s1561_s11  ;;  %v181_v56 = vadd.f32 %v180_v31, %v175_v41  ;;  %v211_v0 = vrot.slane %v1685_v55, 2  ;;  %v222_v25 = vrot.slane %v1865_v10, 2  ;;  %v1234_v31 = vmul.f32 %v1233_v45, %v1844_v37 }
 0x1b0   :  { %1186 = vrot.lane.b32.xlu1 %v1184_v5, %s1562_s12  ;;  %v364_v58 = vsel %vm212_vm11, %v1754_v53, %v363_v59  ;;  %v232_v41 = vrot.slane %v1716_v23, 2  ;;  %v384_v37 = vsel %vm233_vm12, %v1750_v52, %v383_v29  ;;  %v274_v52 = vrot.slane %v1736_v40, 2  ;;  %s1565_s12 = smov 126  }
 0x1b1   :  { %v372_v7 = vpop.permute.xlu2 %371  ;;  %v1894_v2 = vpop.permute.xlu0 %262  ;;  %v193_v13 = vadd.f32 %v191_v42, %v181_v56 }
 0x1b2   :  { %v1896_v14 = vpop.permute.xlu1 %1146  ;;  %v373_v12 = vrot.slane %v372_v7, 2 }
 0x1b7   :  { %1216 = vrot.lane.b32.xlu2 %v1214_v30, %s1563_s13 }
 0x1b8   :  { %1206 = vrot.lane.b32.xlu1 %v1204_v28, %s1563_s13  ;;  %v213_v28 = vsel %vm212_vm11, %v1685_v55, %v211_v0  ;;  %v253_v0 = vrot.slane %v1693_v61, 2  ;;  %s1566_s13 = smov 125  }
 0x1b9   :  { %v1906_v49 = vpop.permute.xlu2 %431  ;;  %v352_v54 = vpop.permute.xlu0 %351 }
 0x1ba   :  { %v200_v60 = vpop.permute.xlu1 %199  ;;  %v353_v62 = vrot.slane %v352_v54, 2 }
 0x1bb   :  { %v201_v5 = vrot.slane %v200_v60, 2 }
 0x1bc   :  { %v354_v16 = vsel %vm190_vm10, %v352_v54, %v353_v62  ;;  %v374_v54 = vsel %vm212_vm11, %v372_v7, %v373_v12  ;;  %v264_v12 = vrot.slane %v1894_v2, 2 }
 0x1bd   :  { %v202_v24 = vsel %vm190_vm10, %v200_v60, %v201_v5  ;;  %v356_v57 = vadd.f32 %v354_v16, %v1706_v18  ;;  %v223_v18 = vsel %vm212_vm11, %v1865_v10, %v222_v25  ;;  %v234_v5 = vsel %vm233_vm12, %v1716_v23, %v232_v41 }
 0x1be   :  { %v204_v30 = vadd.f32 %v202_v24, %v193_v13  ;;  %v255_v25 = vsel %vm254_vm13, %v1693_v61, %v253_v0  ;;  %v265_v23 = vsel %vm254_vm13, %v1894_v2, %v264_v12  ;;  %v276_v61 = vsel %vm275_vm14, %v1736_v40, %v274_v52 }
 0x1bf   :  { %v366_v42 = vadd.f32 %v364_v58, %v356_v57  ;;  %v285_v57 = vrot.slane %v1880_v36, 2  ;;  %v403_v52 = vrot.slane %v1714_v22, 2 }
 0x1c0   :  { %v215_v56 = vadd.f32 %v213_v28, %v204_v30  ;;  %1236 = vrot.lane.b32.xlu1 %v1234_v31, %s1561_s11  ;;  %v520_v30 = vrot.slane %v1787_v50, 2  ;;  %s1564_s11 = smov 127  }
 0x1c1   :  { %v529_v53 = vpop.permute.xlu2 %528  ;;  %v412_v59 = vpop.permute.xlu0 %411  ;;  %v376_v60 = vadd.f32 %v374_v54, %v366_v42  ;;  %v295_v42 = vrot.slane %v1732_v38, 2  ;;  %v286_v2 = vsel %vm275_vm14, %v1880_v36, %v285_v57 }
 0x1c2   :  { %v242_v62 = vpop.permute.xlu1 %241  ;;  %v225_v55 = vadd.f32 %v223_v18, %v215_v56  ;;  %v530_v54 = vrot.slane %v529_v53, 2 }
 0x1c3   :  { %v243_v7 = vrot.slane %v242_v62, 2  ;;  %v386_v45 = vadd.f32 %v384_v37, %v376_v60  ;;  %v297_v40 = vsel %vm296_vm15, %v1732_v38, %v295_v42  ;;  %v413_v38 = vrot.slane %v412_v59, 2 }
 0x1c4   :  { %v236_v13 = vadd.f32 %v234_v5, %v225_v55  ;;  %v540_v55 = vrot.slane %v1785_v21, 2  ;;  %v677_v42 = vrot.slane %v1811_v46, 2 }
 0x1c5   :  { %v244_v10 = vsel %vm233_vm12, %v242_v62, %v243_v7  ;;  %v521_v62 = vsel %vm212_vm11, %v1787_v50, %v520_v30  ;;  %v531_v7 = vsel %vm212_vm11, %v529_v53, %v530_v54  ;;  %v423_v30 = vrot.slane %v1769_v8, 2 }
 0x1c6   :  { %v246_v16 = vadd.f32 %v244_v10, %v236_v13 }
 0x1c8   :  { %v257_v24 = vadd.f32 %v255_v25, %v246_v16 }
 0x1c9   :  { %v1938_v58 = vpop.permute.xlu2 %588  ;;  %v509_v29 = vpop.permute.xlu0 %508 }
 0x1ca   :  { %v267_v31 = vadd.f32 %v265_v23, %v257_v24  ;;  %v305_v28 = vpop.permute.xlu1 %304  ;;  %v510_v41 = vrot.slane %v509_v29, 2 }
 0x1cb   :  { %v306_v60 = vrot.slane %v305_v28, 2 }
 0x1cc   :  { %v278_v56 = vadd.f32 %v276_v61, %v267_v31  ;;  %v511_v18 = vsel %vm190_vm10, %v509_v29, %v510_v41  ;;  %v404_v29 = vsel %vm254_vm13, %v1714_v22, %v403_v52  ;;  %v717_v52 = vrot.slane %v1840_v27, 2 }
 0x1cd   :  { %v513_v37 = vadd.f32 %v511_v18, %v1740_v47  ;;  %v307_v12 = vsel %vm296_vm15, %v305_v28, %v306_v60  ;;  %v541_v47 = vsel %vm233_vm12, %v1785_v21, %v540_v55  ;;  %v433_v28 = vrot.slane %v1906_v49, 2 }
 0x1ce   :  { %v288_v0 = vadd.f32 %v286_v2, %v278_v56  ;;  %v414_v21 = vsel %vm254_vm13, %v412_v59, %v413_v38  ;;  %v443_v2 = vrot.slane %v1767_v6, 2 }
 0x1cf   :  { %v523_v5 = vadd.f32 %v521_v62, %v513_v37  ;;  %v434_v62 = vsel %vm275_vm14, %v1906_v49, %v433_v28 }
 0x1d0   :  { %v299_v13 = vadd.f32 %v297_v40, %v288_v0  ;;  %v678_v0 = vsel %vm212_vm11, %v1811_v46, %v677_v42  ;;  %v697_v40 = vrot.slane %v1809_v44, 2 }
 0x1d1   :  { %v686_v10 = vpop.permute.xlu2 %685  ;;  %v1955_v36 = vpop.permute.xlu0 %568  ;;  %v533_v16 = vadd.f32 %v531_v7, %v523_v5 }
 0x1d2   :  { %v309_v50 = vadd.f32 %v307_v12, %v299_v13  ;;  %v392_v25 = vpop.permute.xlu1 %391  ;;  %v687_v22 = vrot.slane %v686_v10, 2  ;;  %v698_v46 = vsel %vm233_vm12, %v1809_v44, %v697_v40  ;;  %v570_v44 = vrot.slane %v1955_v36, 2 }
 0x1d3   :  { %v393_v24 = vrot.slane %v392_v25, 2  ;;  %v543_v57 = vadd.f32 %v541_v47, %v533_v16  ;;  %v834_v47 = vrot.slane %v1783_v20, 2 }
 0x1d4   :  { %316 = vst [vmem:[#allocation1] ss:$4 sm:$0xff] %v309_v50  ;;  %v688_v13 = vsel %vm212_vm11, %v686_v10, %v687_v22  ;;  %v560_v10 = vrot.slane %v1748_v51, 2 }
 0x1d5   :  { %v394_v53 = vsel %vm233_vm12, %v392_v25, %v393_v24 }
 0x1d6   :  { %v396_v23 = vadd.f32 %v394_v53, %v386_v45  ;;  %v424_v45 = vsel %vm275_vm14, %v1769_v8, %v423_v30  ;;  %v444_v8 = vsel %vm296_vm15, %v1767_v6, %v443_v2 }
 0x1d8   :  { %v406_v31 = vadd.f32 %v404_v29, %v396_v23 }
 0x1d9   :  { %v706_v41 = vpop.permute.xlu2 %705  ;;  %v666_v61 = vpop.permute.xlu0 %665 }
 0x1da   :  { %v416_v54 = vadd.f32 %v414_v21, %v406_v31  ;;  %v452_v56 = vpop.permute.xlu1 %451  ;;  %v667_v18 = vrot.slane %v666_v61, 2  ;;  %v707_v12 = vrot.slane %v706_v41, 2 }
 0x1db   :  { %v453_v59 = vrot.slane %v452_v56, 2  ;;  %v1985_v53 = vld.sshfl [vmem:[#allocation1] sm:$0xff pattern:$0x73625140] }
 0x1dc   :  { %v426_v60 = vadd.f32 %v424_v45, %v416_v54  ;;  %v668_v37 = vsel %vm190_vm10, %v666_v61, %v667_v18  ;;  %v1988_v30 = vld.sshfl [vmem:[#allocation1 + $0x8] sm:$0xff pattern:$0x73625140]  ;;  %v708_v31 = vsel %vm233_vm12, %v706_v41, %v707_v12  ;;  %v835_v54 = vsel %vm212_vm11, %v1783_v20, %v834_v47 }
 0x1dd   :  { %v670_v55 = vadd.f32 %v668_v37, %v1775_v15  ;;  %v454_v49 = vsel %vm296_vm15, %v452_v56, %v453_v59  ;;  %v718_v56 = vsel %vm254_vm13, %v1840_v27, %v717_v52  ;;  %v561_v41 = vsel %vm254_vm13, %v1748_v51, %v560_v10 }
 0x1de   :  { %v436_v5 = vadd.f32 %v434_v62, %v426_v60  ;;  %v580_v45 = vrot.slane %v1799_v35, 2  ;;  %v590_v37 = vrot.slane %v1938_v58, 2  ;;  %v737_v20 = vrot.slane %v1795_v33, 2 }
 0x1df   :  { %v680_v7 = vadd.f32 %v678_v0, %v670_v55  ;;  %v600_v0 = vrot.slane %v1797_v34, 2 }
 0x1e0   :  { %v446_v16 = vadd.f32 %v444_v8, %v436_v5  ;;  %v581_v51 = vsel %vm275_vm14, %v1799_v35, %v580_v45  ;;  %v591_v12 = vsel %vm275_vm14, %v1938_v58, %v590_v37  ;;  %v738_v35 = vsel %vm275_vm14, %v1795_v33, %v737_v20 }
 0x1e1   :  { %v690_v50 = vadd.f32 %v688_v13, %v680_v7  ;;  %v746_v15 = vpop.permute.xlu2 %745  ;;  %v823_v25 = vpop.permute.xlu0 %822  ;;  %v854_v33 = vrot.slane %v1824_v3, 2 }
 0x1e2   :  { %v456_v24 = vadd.f32 %v454_v49, %v446_v16  ;;  %v549_v38 = vpop.permute.xlu1 %548  ;;  %v824_v6 = vrot.slane %v823_v25, 2  ;;  %v747_v40 = vrot.slane %v746_v15, 2  ;;  %v757_v49 = vrot.slane %v1807_v43, 2 }
 0x1e3   :  { %v550_v23 = vrot.slane %v549_v38, 2  ;;  %v700_v29 = vadd.f32 %v698_v46, %v690_v50 }
 0x1e4   :  { %v825_v28 = vsel %vm190_vm10, %v823_v25, %v824_v6  ;;  %463 = vst [vmem:[#allocation1] ss:$4 sm:$0xff] %v456_v24  ;;  %v601_v25 = vsel %vm296_vm15, %v1797_v34, %v600_v0  ;;  %v748_v52 = vsel %vm275_vm14, %v746_v15, %v747_v40  ;;  %v758_v10 = vsel %vm296_vm15, %v1807_v43, %v757_v49 }
 0x1e5   :  { %v551_v21 = vsel %vm233_vm12, %v549_v38, %v550_v23  ;;  %v827_v61 = vadd.f32 %v825_v28, %v1830_v17  ;;  %v710_v42 = vadd.f32 %v708_v31, %v700_v29  ;;  %v571_v17 = vsel %vm254_vm13, %v1955_v36, %v570_v44 }
 0x1e6   :  { %v553_v18 = vadd.f32 %v551_v21, %v543_v57 }
 0x1e7   :  { %v720_v2 = vadd.f32 %v718_v56, %v710_v42  ;;  %v837_v22 = vadd.f32 %v835_v54, %v827_v61  ;;  %v855_v42 = vsel %vm233_vm12, %v1824_v3, %v854_v33  ;;  %v874_v54 = vrot.slane %v1838_v26, 2 }
 0x1e8   :  { %v563_v60 = vadd.f32 %v561_v41, %v553_v18  ;;  %v894_v41 = vrot.slane %v1822_v1, 2 }
 0x1e9   :  { %v726_v62 = vpop.permute.xlu0 %725  ;;  %v766_v55 = vpop.permute.xlu2 %765 }
 0x1ea   :  { %v573_v59 = vadd.f32 %v571_v17, %v563_v60  ;;  %v609_v27 = vpop.permute.xlu1 %608  ;;  %v727_v57 = vrot.slane %v726_v62, 2  ;;  %v767_v15 = vrot.slane %v766_v55, 2  ;;  %v875_v17 = vsel %vm254_vm13, %v1838_v26, %v874_v54 }
 0x1eb   :  { %v466_v5 = vld.sshfl [vmem:[#allocation1 + $0x10] sm:$0xff pattern:$0x73625140]  ;;  %v465_v36 = vld.sshfl [vmem:[#allocation1 + $0x8] sm:$0xff pattern:$0x73625140] }
 0x1ec   :  { %v583_v8 = vadd.f32 %v581_v51, %v573_v59  ;;  %v728_v7 = vsel %vm254_vm13, %v726_v62, %v727_v57  ;;  %471 = vrot.lane.b32.xlu1 %v466_v5, %s1564_s11  ;;  %v464_v13 = vld.sshfl [vmem:[#allocation1] sm:$0xff pattern:$0x73625140]  ;;  %v610_v16 = vrot.slane %v609_v27, 2  ;;  %469 = vrot.lane.b32.xlu0 %v465_v36, %s1564_s11  ;;  %v768_v45 = vsel %vm296_vm15, %v766_v55, %v767_v15 }
 0x1ed   :  { %v730_v47 = vadd.f32 %v728_v7, %v720_v2  ;;  %467 = vrot.lane.b32.xlu2 %v464_v13, %s1564_s11  ;;  %v914_v7 = vrot.slane %v1836_v19, 2  ;;  %v1051_v15 = vrot.slane %v1851_v63, 2 }
 0x1ee   :  { %v593_v50 = vadd.f32 %v591_v12, %v583_v8  ;;  %v611_v38 = vsel %vm296_vm15, %v609_v27, %v610_v16  ;;  %v895_v8 = vsel %vm275_vm14, %v1822_v1, %v894_v41 }
 0x1ef   :  { %v740_v46 = vadd.f32 %v738_v35, %v730_v47 }
 0x1f0   :  { %v603_v24 = vadd.f32 %v601_v25, %v593_v50  ;;  %v1011_v25 = vrot.slane %v1853_v48, 2 }
 0x1f1   :  { %v750_v58 = vadd.f32 %v748_v52, %v740_v46  ;;  %v863_v6 = vpop.permute.xlu0 %862  ;;  %v903_v44 = vpop.permute.xlu2 %902 }
 0x1f2   :  { %v613_v23 = vadd.f32 %v611_v38, %v603_v24  ;;  %v843_v29 = vpop.permute.xlu1 %842  ;;  %v864_v21 = vrot.slane %v863_v6, 2  ;;  %v904_v0 = vrot.slane %v903_v44, 2 }
 0x1f3   :  { %v760_v31 = vadd.f32 %v758_v10, %v750_v58  ;;  %v844_v28 = vrot.slane %v843_v29, 2 }
 0x1f4   :  { %620 = vst [vmem:[#allocation1] ss:$4 sm:$0xff] %v613_v23  ;;  %v865_v43 = vsel %vm233_vm12, %v863_v6, %v864_v21  ;;  %v905_v16 = vsel %vm275_vm14, %v903_v44, %v904_v0 }
 0x1f5   :  { %v845_v34 = vsel %vm212_vm11, %v843_v29, %v844_v28  ;;  %v770_v62 = vadd.f32 %v768_v45, %v760_v31  ;;  %v1031_v29 = vrot.slane %v1867_v11, 2  ;;  %v1052_v45 = vsel %vm275_vm14, %v1851_v63, %v1051_v15 }
 0x1f6   :  { %v847_v61 = vadd.f32 %v845_v34, %v837_v22  ;;  %v991_v22 = vrot.slane %v1869_v32, 2 }
 0x1f8   :  { %v857_v56 = vadd.f32 %v855_v42, %v847_v61  ;;  %v992_v36 = vsel %vm212_vm11, %v1869_v32, %v991_v22  ;;  %v1032_v61 = vsel %vm254_vm13, %v1867_v11, %v1031_v29  ;;  %v1148_v42 = vrot.slane %v1896_v14, 2 }
 0x1f9   :  { %v883_v18 = vpop.permute.xlu0 %882  ;;  %v923_v40 = vpop.permute.xlu2 %922 }
 0x1fa   :  { %v867_v2 = vadd.f32 %v865_v43, %v857_v56  ;;  %v980_v60 = vpop.permute.xlu1 %979  ;;  %v884_v37 = vrot.slane %v883_v18, 2  ;;  %v924_v47 = vrot.slane %v923_v40, 2 }
 0x1fb   :  { %v981_v3 = vrot.slane %v980_v60, 2  ;;  %v623_v20 = vld.sshfl [vmem:[#allocation1 + $0x10] sm:$0xff pattern:$0x73625140] }
 0x1fc   :  { %v877_v59 = vadd.f32 %v875_v17, %v867_v2  ;;  %v885_v27 = vsel %vm254_vm13, %v883_v18, %v884_v37  ;;  %628 = vrot.lane.b32.xlu1 %v623_v20, %s1565_s12  ;;  %v622_v57 = vld.sshfl [vmem:[#allocation1 + $0x8] sm:$0xff pattern:$0x73625140]  ;;  %v621_v51 = vld.sshfl [vmem:[#allocation1] sm:$0xff pattern:$0x73625140]  ;;  %v925_v38 = vsel %vm296_vm15, %v923_v40, %v924_v47  ;;  %v1149_v2 = vsel %vm212_vm11, %v1896_v14, %v1148_v42 }
 0x1fd   :  { %v982_v55 = vsel %vm190_vm10, %v980_v60, %v981_v3  ;;  %626 = vrot.lane.b32.xlu0 %v622_v57, %s1565_s12  ;;  %624 = vrot.lane.b32.xlu2 %v621_v51, %s1565_s12  ;;  %777 = vst [vmem:[#allocation1] ss:$4 sm:$0xff] %v770_v62 }
 0x1fe   :  { %v984_v26 = vadd.f32 %v982_v55, %v1859_v9  ;;  %v887_v5 = vadd.f32 %v885_v27, %v877_v59  ;;  %v915_v9 = vsel %vm296_vm15, %v1836_v19, %v914_v7  ;;  %v1012_v19 = vsel %vm233_vm12, %v1853_v48, %v1011_v25 }
 0x200   :  { %v897_v13 = vadd.f32 %v895_v8, %v887_v5  ;;  %v994_v12 = vadd.f32 %v992_v36, %v984_v26 }
 0x201   :  { %v1020_v35 = vpop.permute.xlu0 %1019  ;;  %v1177_v11 = vpop.permute.xlu2 %1176 }
 0x202   :  { %v907_v49 = vadd.f32 %v905_v16, %v897_v13  ;;  %v1000_v50 = vpop.permute.xlu1 %999  ;;  %v1021_v58 = vrot.slane %v1020_v35, 2  ;;  %v1178_v13 = vrot.slane %v1177_v11, 2 }
 0x203   :  { %v1001_v46 = vrot.slane %v1000_v50, 2 }
 0x204   :  { %v917_v1 = vadd.f32 %v915_v9, %v907_v49  ;;  %v780_v52 = vld.sshfl [vmem:[#allocation1 + $0x10] sm:$0xff pattern:$0x73625140]  ;;  %v779_v24 = vld.sshfl [vmem:[#allocation1 + $0x8] sm:$0xff pattern:$0x73625140]  ;;  %v1022_v31 = vsel %vm233_vm12, %v1020_v35, %v1021_v58  ;;  %v1179_v49 = vsel %vm233_vm12, %v1177_v11, %v1178_v13 }
 0x205   :  { %v1002_v32 = vsel %vm212_vm11, %v1000_v50, %v1001_v46  ;;  %785 = vrot.lane.b32.xlu0 %v780_v52, %s1566_s13  ;;  %783 = vrot.lane.b32.xlu2 %v779_v24, %s1566_s13  ;;  %v778_v6 = vld.sshfl [vmem:[#allocation1] sm:$0xff pattern:$0x73625140] }
 0x206   :  { %v927_v10 = vadd.f32 %v925_v38, %v917_v1  ;;  %v1004_v23 = vadd.f32 %v1002_v32, %v994_v12  ;;  %781 = vrot.lane.b32.xlu1 %v778_v6, %s1566_s13 }
 0x208   :  { %v1014_v33 = vadd.f32 %v1012_v19, %v1004_v23  ;;  %934 = vst [vmem:[#allocation1] ss:$4 sm:$0xff] %v927_v10 }
 0x209   :  { %v1040_v28 = vpop.permute.xlu0 %1039  ;;  %v1080_v51 = vpop.permute.xlu2 %1079 }
 0x20a   :  { %v1024_v44 = vadd.f32 %v1022_v31, %v1014_v33  ;;  %v1137_v34 = vpop.permute.xlu1 %1136  ;;  %v1041_v21 = vrot.slane %v1040_v28, 2  ;;  %v1081_v26 = vrot.slane %v1080_v51, 2 }
 0x20b   :  { %v1138_v54 = vrot.slane %v1137_v34, 2 }
 0x20c   :  { %v1034_v56 = vadd.f32 %v1032_v61, %v1024_v44  ;;  %v1042_v48 = vsel %vm254_vm13, %v1040_v28, %v1041_v21  ;;  %v1082_v12 = vsel %vm296_vm15, %v1080_v51, %v1081_v26 }
 0x20d   :  { %v1139_v43 = vsel %vm190_vm10, %v1137_v34, %v1138_v54 }
 0x20e   :  { %v1141_v18 = vadd.f32 %v1139_v43, %v1888_v4  ;;  %v1044_v41 = vadd.f32 %v1042_v48, %v1034_v56  ;;  %v1168_v4 = vrot.slane %v1882_v39, 2 }
 0x20f   :  { %v937_v60 = vld.sshfl [vmem:[#allocation1 + $0x10] sm:$0xff pattern:$0x73625140]  ;;  %v936_v37 = vld.sshfl [vmem:[#allocation1 + $0x8] sm:$0xff pattern:$0x73625140] }
 0x210   :  { %942 = vrot.lane.b32.xlu0 %v937_v60, %s1567_s1  ;;  %940 = vrot.lane.b32.xlu2 %v936_v37, %s1567_s1  ;;  %v935_v17 = vld.sshfl [vmem:[#allocation1] sm:$0xff pattern:$0x73625140]  ;;  %v1151_v22 = vadd.f32 %v1149_v2, %v1141_v18  ;;  %v1054_v62 = vadd.f32 %v1052_v45, %v1044_v41  ;;  %v1169_v14 = vsel %vm233_vm12, %v1882_v39, %v1168_v4 }
 0x211   :  { %938 = vrot.lane.b32.xlu1 %v935_v17, %s1567_s1  ;;  %v1070_v57 = vpop.permute.xlu0 %1069  ;;  %v1217_v46 = vpop.permute.xlu2 %1216 }
 0x212   :  { %v1157_v3 = vpop.permute.xlu1 %1156  ;;  %v1071_v55 = vrot.slane %v1070_v57, 2  ;;  %v1218_v24 = vrot.slane %v1217_v46, 2 }
 0x213   :  { %v1158_v20 = vrot.slane %v1157_v3, 2 }
 0x214   :  { %v1072_v7 = vsel %vm296_vm15, %v1070_v57, %v1071_v55  ;;  %v1219_v31 = vsel %vm275_vm14, %v1217_v46, %v1218_v24 }
 0x215   :  { %v1159_v59 = vsel %vm212_vm11, %v1157_v3, %v1158_v20  ;;  %v171_v3 = vld [vmem:[#allocation10] ss:$8 sm:$0x3] }
 0x216   :  { %v1161_v63 = vadd.f32 %v1159_v59, %v1151_v22  ;;  %v483_v59 = vld [vmem:[#allocation10 + $0x2] ss:$8 sm:$0x3]  ;;  %v311_v26 = vperm.slane %v171_v3, 0 }
 0x218   :  { %v1171_v27 = vadd.f32 %v1169_v14, %v1161_v63 }
 0x219   :  { %v1197_v47 = vpop.permute.xlu0 %1196 }
 0x21a   :  { %v1060_v0 = vpop.permute.xlu1 %1059  ;;  %v1181_v9 = vadd.f32 %v1179_v49, %v1171_v27  ;;  %v1198_v25 = vrot.slane %v1197_v47, 2  ;;  %v312_v27 = vperm.slane %v171_v3, 1  ;;  %v954_v49 = vld [vmem:[#allocation10 + $0x5] ss:$8 sm:$0x3] }
 0x21b   :  { %v1061_v40 = vrot.slane %v1060_v0, 2 }
 0x21c   :  { %v1199_v38 = vsel %vm254_vm13, %v1197_v47, %v1198_v25 }
 0x21d   :  { %v1062_v5 = vsel %vm275_vm14, %v1060_v0, %v1061_v40  ;;  %v640_v0 = vld [vmem:[#allocation10 + $0x3] ss:$8 sm:$0x3]  ;;  %v616_v40 = vperm.slane %v483_v59, 1 }
 0x21e   :  { %v1064_v8 = vadd.f32 %v1062_v5, %v1054_v62  ;;  %v326_v62 = vld [vmem:[#allocation10 + $0x1] ss:$8 sm:$0x3]  ;;  %v615_v5 = vperm.slane %v483_v59, 0 }
 0x21f   :  { %v459_v14 = vperm.slane %v326_v62, 1  ;;  %v458_v57 = vperm.slane %v326_v62, 0 }
 0x220   :  { %v1074_v36 = vadd.f32 %v1072_v7, %v1064_v8  ;;  %v797_v7 = vld [vmem:[#allocation10 + $0x4] ss:$8 sm:$0x3] }
 0x221   :  { %v1227_v6 = vpop.permute.xlu0 %1226  ;;  %v930_v25 = vperm.slane %v797_v7, 1 }
 0x222   :  { %v1084_v16 = vadd.f32 %v1082_v12, %v1074_v36  ;;  %v1187_v35 = vpop.permute.xlu1 %1186  ;;  %v1228_v28 = vrot.slane %v1227_v6, 2  ;;  %v773_v12 = vperm.slane %v640_v0, 1 }
 0x223   :  { %v1188_v39 = vrot.slane %v1187_v35, 2 }
 0x224   :  { %1091 = vst [vmem:[#allocation1] ss:$4 sm:$0xff] %v1084_v16  ;;  %v1229_v21 = vsel %vm296_vm15, %v1227_v6, %v1228_v28  ;;  %v322_v16 = vmul.f32 %v1988_v30, %v312_v27  ;;  %v1111_v28 = vld [vmem:[#allocation10 + $0x6] ss:$8 sm:$0x3] }
 0x225   :  { %v1189_v50 = vsel %vm254_vm13, %v1187_v35, %v1188_v39  ;;  %v772_v35 = vperm.slane %v640_v0, 0 }
 0x226   :  { %v1191_v1 = vadd.f32 %v1189_v50, %v1181_v9 }
 0x228   :  { %v1201_v10 = vadd.f32 %v1199_v38, %v1191_v1  ;;  %v929_v38 = vperm.slane %v797_v7, 0 }
 0x22a   :  { %v1207_v52 = vpop.permute.xlu1 %1206 }
 0x22b   :  { %v1208_v32 = vrot.slane %v1207_v52, 2  ;;  %v1094_v58 = vld.sshfl [vmem:[#allocation1 + $0x10] sm:$0xff pattern:$0x73625140] }
 0x22c   :  { %1099 = vrot.lane.b32.xlu0 %v1094_v58, %s1568_s2  ;;  %v1093_v23 = vld.sshfl [vmem:[#allocation1 + $0x8] sm:$0xff pattern:$0x73625140]  ;;  %v1092_v19 = vld.sshfl [vmem:[#allocation1] sm:$0xff pattern:$0x73625140] }
 0x22d   :  { %v1209_v29 = vsel %vm275_vm14, %v1207_v52, %v1208_v32  ;;  %1097 = vrot.lane.b32.xlu2 %v1093_v23, %s1568_s2  ;;  %1095 = vrot.lane.b32.xlu1 %v1092_v19, %s1568_s2  ;;  %v321_v52 = vmul.f32 %v1985_v53, %v311_v26  ;;  %v1087_v23 = vperm.slane %v954_v49, 1 }
 0x22e   :  { %v1211_v33 = vadd.f32 %v1209_v29, %v1201_v10 }
 0x230   :  { %v1221_v44 = vadd.f32 %v1219_v31, %v1211_v33  ;;  %v1086_v33 = vperm.slane %v954_v49, 0 }
 0x232   :  { %v1237_v34 = vpop.permute.xlu1 %1236  ;;  %v1231_v61 = vadd.f32 %v1229_v21, %v1221_v44 }
 0x233   :  { %v1238_v15 = vrot.slane %v1237_v34, 2 }
 0x235   :  { %v1239_v42 = vsel %vm296_vm15, %v1237_v34, %v1238_v15 }
 0x236   :  { %v1241_v54 = vadd.f32 %v1239_v42, %v1231_v61 }
 0x238   :  { %1248 = vst [vmem:[#allocation1] ss:$4 sm:$0xff] %v1241_v54  ;;  %v1244_v54 = vperm.slane %v1111_v28, 1 }
 0x23f   :  { %v1251_v56 = vld.sshfl [vmem:[#allocation1 + $0x10] sm:$0xff pattern:$0x73625140]  ;;  %v1250_v48 = vld.sshfl [vmem:[#allocation1 + $0x8] sm:$0xff pattern:$0x73625140] }
 0x240   :  { %1256 = vrot.lane.b32.xlu0 %v1251_v56, %s1569_s27  ;;  %1254 = vrot.lane.b32.xlu2 %v1250_v48, %s1569_s27  ;;  %v1249_v43 = vld.sshfl [vmem:[#allocation1] sm:$0xff pattern:$0x73625140] }
 0x241   :  { %1252 = vrot.lane.b32.xlu1 %v1249_v43, %s1569_s27  ;;  %v1243_v43 = vperm.slane %v1111_v28, 0 }
 0x247   :  { %v468_v18 = vpop.permute.xlu2 %467 }
 0x257   :  { %v625_v2 = vpop.permute.xlu2 %624 }
 0x25e   :  { %v470_v41 = vpop.permute.xlu0 %469  ;;  %v472_v45 = vpop.permute.xlu1 %471 }
 0x25f   :  { %v784_v11 = vpop.permute.xlu2 %783  ;;  %v475_v51 = vsel %vm473_vm1, %v470_v41, %v472_v45  ;;  %v474_v55 = vsel %vm473_vm1, %v468_v18, %v470_v41 }
 0x260   :  { %v479_v36 = vmul.f32 %v475_v51, %v459_v14  ;;  %v478_v47 = vmul.f32 %v474_v55, %v458_v57 }
 0x262   :  { %v481_v6 = vadd.f32 %v479_v36, %v322_v16  ;;  %v480_v19 = vadd.f32 %v478_v47, %v321_v52 }
 0x26a   :  { %v941_v4 = vpop.permute.xlu2 %940 }
 0x26e   :  { %v629_v37 = vpop.permute.xlu1 %628 }
 0x26f   :  { %v627_v60 = vpop.permute.xlu0 %626 }
 0x270   :  { %v632_v8 = vsel %vm630_vm2, %v627_v60, %v629_v37  ;;  %v631_v13 = vsel %vm630_vm2, %v625_v2, %v627_v60 }
 0x271   :  { %v636_v50 = vmul.f32 %v632_v8, %v616_v40  ;;  %v635_v24 = vmul.f32 %v631_v13, %v615_v5 }
 0x273   :  { %v638_v44 = vadd.f32 %v636_v50, %v481_v6  ;;  %v637_v21 = vadd.f32 %v635_v24, %v480_v19 }
 0x277   :  { %v786_v17 = vpop.permute.xlu0 %785 }
 0x278   :  { %v782_v22 = vpop.permute.xlu1 %781  ;;  %v789_v39 = vsel %vm787_vm3, %v784_v11, %v786_v17 }
 0x279   :  { %v788_v9 = vsel %vm787_vm3, %v782_v22, %v784_v11  ;;  %v793_v10 = vmul.f32 %v789_v39, %v773_v12 }
 0x27a   :  { %v792_v29 = vmul.f32 %v788_v9, %v772_v35 }
 0x27b   :  { %v795_v61 = vadd.f32 %v793_v10, %v638_v44 }
 0x27c   :  { %v794_v56 = vadd.f32 %v792_v29, %v637_v21 }
 0x282   :  { %v943_v20 = vpop.permute.xlu0 %942 }
 0x283   :  { %v939_v63 = vpop.permute.xlu1 %938  ;;  %v946_v32 = vsel %vm944_vm4, %v941_v4, %v943_v20 }
 0x284   :  { %v945_v30 = vsel %vm944_vm4, %v939_v63, %v941_v4  ;;  %v950_v34 = vmul.f32 %v946_v32, %v930_v25 }
 0x285   :  { %v949_v15 = vmul.f32 %v945_v30, %v929_v38 }
 0x286   :  { %v952_v18 = vadd.f32 %v950_v34, %v795_v61 }
 0x287   :  { %v1098_v46 = vpop.permute.xlu2 %1097  ;;  %v951_v2 = vadd.f32 %v949_v15, %v794_v56 }
 0x29a   :  { %v1255_v41 = vpop.permute.xlu2 %1254 }
 0x29e   :  { %v1100_v1 = vpop.permute.xlu0 %1099 }
 0x29f   :  { %v1096_v58 = vpop.permute.xlu1 %1095  ;;  %v1103_v31 = vsel %vm1101_vm5, %v1098_v46, %v1100_v1 }
 0x2a0   :  { %v1102_v53 = vsel %vm1101_vm5, %v1096_v58, %v1098_v46  ;;  %v1107_v42 = vmul.f32 %v1103_v31, %v1087_v23 }
 0x2a1   :  { %v1106_v48 = vmul.f32 %v1102_v53, %v1086_v33 }
 0x2a2   :  { %v1109_v11 = vadd.f32 %v1107_v42, %v952_v18 }
 0x2a3   :  { %v1108_v62 = vadd.f32 %v1106_v48, %v951_v2 }
 0x2b2   :  { %v1257_v45 = vpop.permute.xlu0 %1256 }
 0x2b3   :  { %v1253_v60 = vpop.permute.xlu1 %1252  ;;  %v1260_v37 = vsel %vm1258_vm6, %v1255_v41, %v1257_v45 }
 0x2b4   :  { %v1259_v17 = vsel %vm1258_vm6, %v1253_v60, %v1255_v41  ;;  %v1264_v22 = vmul.f32 %v1260_v37, %v1244_v54 }
 0x2b5   :  { %v1263_v3 = vmul.f32 %v1259_v17, %v1243_v43 }
 0x2b6   :  { %v1266_v4 = vadd.f32 %v1264_v22, %v1109_v11 }
 0x2b7   :  { %v1265_v20 = vadd.f32 %v1263_v3, %v1108_v62 }
 0x2b8   :  { %v1428_v59 = vmul.f32 -1.442695, %v1266_v4 }
 0x2b9   :  { %v1427_v63 = vmul.f32 -1.442695, %v1265_v20 }
 0x2ba   :  { %1450 = vpow2.f32 %v1428_v59 }
 0x2bb   :  { %1452 = vpow2.f32 %v1427_v63 }
 0x2c0   :  { %v1451_v14 = vpop.eup %1450 }
 0x2c1   :  { %v1453_v27 = vpop.eup %1452  ;;  %v1274_v57 = vadd.f32 1.0, %v1451_v14 }
 0x2c2   :  { %v1273_v51 = vadd.f32 1.0, %v1453_v27 }
 0x2c3   :  { %1454 = vrcp.f32 %v1274_v57  ;;  %v1301_v7 = vand.u32 2147483648, %v1274_v57  ;;  %v1299_v13 = vand.u32 2147483647, %v1274_v57  ;;  %vm1295_vm9 = vweird.f32 %v1274_v57 }
 0x2c4   :  { %1456 = vrcp.f32 %v1273_v51  ;;  %v1286_v16 = vand.u32 2147483648, %v1273_v51  ;;  %v1284_v47 = vand.u32 2147483647, %v1273_v51  ;;  %vm1280_vm10 = vweird.f32 %v1273_v51 }
 0x2c5   :  { %v1302_v49 = vor.u32 1.1754944e-38, %v1301_v7  ;;  %vm1300_vm13 = vcmp.eq.f32.partialorder %v1299_v13, 8.507059e+37 }
 0x2c6   :  { %v1287_v25 = vor.u32 1.1754944e-38, %v1286_v16  ;;  %vm1285_vm14 = vcmp.eq.f32.partialorder %v1284_v47, 8.507059e+37 }
 0x2c9   :  { %v1455_v0 = vpop.eup %1454 }
 0x2ca   :  { %v1457_v55 = vpop.eup %1456  ;;  %v1291_v40 = vmul.f32 %v1455_v0, %v1274_v57  ;;  %vm1296_vm7 = vweird.f32 %v1455_v0 }
 0x2cb   :  { %v1276_v26 = vmul.f32 %v1457_v55, %v1273_v51  ;;  %vm1281_vm8 = vweird.f32 %v1457_v55  ;;  %vm1297_vm11 = vmor %vm1295_vm9, %vm1296_vm7 }
 0x2cc   :  { %v1292_v5 = vsub.f32 1.0, %v1291_v40  ;;  %vm1282_vm12 = vmor %vm1280_vm10, %vm1281_vm8 }
 0x2cd   :  { %v1277_v8 = vsub.f32 1.0, %v1276_v26 }
 0x2ce   :  { %v1293_v36 = vmul.f32 %v1455_v0, %v1292_v5 }
 0x2cf   :  { %v1278_v12 = vmul.f32 %v1457_v55, %v1277_v8 }
 0x2d0   :  { %v1294_v35 = vadd.f32 %v1455_v0, %v1293_v36 }
 0x2d1   :  { %v1279_v39 = vadd.f32 %v1457_v55, %v1278_v12 }
 0x2d2   :  { %v1298_v50 = vsel %vm1297_vm11, %v1455_v0, %v1294_v35 }
 0x2d3   :  { %v1283_v9 = vsel %vm1282_vm12, %v1457_v55, %v1279_v39  ;;  %v1303_v46 = vsel %vm1300_vm13, %v1302_v49, %v1298_v50 }
 0x2d4   :  { %v1307_v1 = vrot.slane %v1303_v46, 6  ;;  %v1288_v52 = vsel %vm1285_vm14, %v1287_v25, %v1283_v9 }
 0x2d6   :  { %v1308_v24 = vsel %vm145_vm0, %v1288_v52, %v1307_v1 }
 0x2d7   :  { %1310 = vst [vmem:[#allocation13] sm:$0xf] %v1308_v24 }
 0x2d8   :  { %1321 = dma.vmem_to_hbm [thread:$0]  %s1317_s29, 64, %s1319_s8, [#allocation8]  }
 0x2d9   :  { %1548 = dma.done.wait [#allocation8], 64  }
 0x2da   :  { %1549 = vsyncadd [#allocation8], 4294967232 }
 0x2db   :  { %1326 = vsyncpa [#allocation7], 1 }
 0x2dc   :  { %1327 = vsyncpa [#allocation11], 1 }
 0x2dd   :  { %1328 = vsyncpa [#allocation8], 1 }
 0x2de   :  { %1329 = vsyncpa [#allocation9], 1 }

</bundles_post_ra>
